<compile_context>
chip_gen: v5e
topology: v5e:2x2
jax: 0.10.0
libtpu: 0.0.40
codegen_flags: <defaults>
</compile_context>

<pallas_src>
import functools

import jax
import jax.numpy as jnp
from jax.experimental import pallas as pl
from jax.experimental.pallas import tpu as pltpu

LANE = 128          # boxes per lane row
SUBLANE = 8         # f32 vreg sublane count
ROW_UNIT = 64       # r_tile granularity -> chunks-per-tile is a multiple of 8
R_TILE_MAX = 1024   # rows per grid step: (4, 1024, 128) f32 = 2 MiB per input
UNROLL = 8          # chunks per fori_loop iteration (manual unroll)


def _cdiv(a, b):
    return -(-a // b)


def _round_up(a, b):
    return _cdiv(a, b) * b


def _diou_kernel(pred_ref, tgt_ref, out_ref, *, eps, n_valid):
    """pred_ref / tgt_ref: (4, r_tile, LANE) coordinate-major planes
    (plane 0..3 = x1, y1, x2, y2); box j lives at row j // 128, lane j % 128.

    out_ref: (SUBLANE, LANE) per-block partial sums of the masked loss.
    """
    r_tile = pred_ref.shape[1]
    n_chunks = r_tile // SUBLANE          # multiple of UNROLL by construction
    row0 = pl.program_id(0) * r_tile

    # Loop-invariant (8, 128) index planes for the validity mask.
    sub_i = jax.lax.broadcasted_iota(jnp.int32, (SUBLANE, LANE), 0)
    lane_i = jax.lax.broadcasted_iota(jnp.int32, (SUBLANE, LANE), 1)

    def chunk_loss(rs):
        sl = pl.ds(rs, SUBLANE)
        x1 = pred_ref[0, sl, :]
        y1 = pred_ref[1, sl, :]
        x2 = pred_ref[2, sl, :]
        y2 = pred_ref[3, sl, :]
        x1g = tgt_ref[0, sl, :]
        y1g = tgt_ref[1, sl, :]
        x2g = tgt_ref[2, sl, :]
        y2g = tgt_ref[3, sl, :]

        # Intersection / union (pure elementwise VPU work).
        iw = jnp.maximum(jnp.minimum(x2, x2g) - jnp.maximum(x1, x1g), 0.0)
        ih = jnp.maximum(jnp.minimum(y2, y2g) - jnp.maximum(y1, y1g), 0.0)
        inter = iw * ih
        union = (x2 - x1) * (y2 - y1) + (x2g - x1g) * (y2g - y1g) - inter
        u = union + eps

        # Smallest enclosing-box diagonal.
        dx = jnp.maximum(x2, x2g) - jnp.minimum(x1, x1g)
        dy = jnp.maximum(y2, y2g) - jnp.minimum(y1, y1g)
        diag_sq = dx * dx + dy * dy + eps

        # Center distance; the (2*center) trick avoids two 0.5 multiplies.
        cx = (x1 + x2) - (x1g + x2g)
        cy = (y1 + y2) - (y1g + y2g)
        centers_sq = 0.25 * (cx * cx + cy * cy)

        # loss = 1 - inter/u + centers_sq/diag_sq, folded into one divide.
        loss = 1.0 + (centers_sq * u - inter * diag_sq) / (u * diag_sq)

        # Mask padding boxes (global box index >= n_valid) -> they add 0.
        idx = (row0 + rs + sub_i) * LANE + lane_i
        return jnp.where(idx < n_valid, loss, 0.0)

    def block(j, acc):
        base = pl.multiple_of(j * (UNROLL * SUBLANE), UNROLL * SUBLANE)
        for kk in range(UNROLL):  # manual unroll: keeps live set ~1 chunk
            rs = pl.multiple_of(base + kk * SUBLANE, SUBLANE)
            acc = acc + chunk_loss(rs)
        return acc

    acc = jax.lax.fori_loop(0, n_chunks // UNROLL, block,
                            jnp.zeros((SUBLANE, LANE), jnp.float32))
    out_ref[...] = acc


@functools.partial(jax.jit, static_argnames=("eps",))
def diou_loss(pred_box, target_box, eps=1e-6):
    """Mean DIoU loss over all boxes (matches DIoULoss.forward)."""
    # _upcast_non_float: run everything in f32 (JAX default float width).
    pred = pred_box.reshape(-1, 4).astype(jnp.float32)
    tgt = target_box.reshape(-1, 4).astype(jnp.float32)

    n = pred.shape[0]
    if n == 0:
        # torch .mean() over an empty tensor is NaN; avoid an empty grid.
        return jnp.array(jnp.nan, jnp.float32)

    # --- tiling --------------------------------------------------------------
    rows_min = _round_up(_cdiv(n, LANE), ROW_UNIT)
    # Always >= 2 blocks (and an even count) so the "parallel" axis can use
    # both v7x TensorCores; blocks capped at R_TILE_MAX rows (2 MiB / input,
    # 8 MiB total double-buffered) to fit every generation's scoped VMEM.
    num_blocks = _round_up(max(2, _cdiv(rows_min, R_TILE_MAX)), 2)
    r_tile = _round_up(_cdiv(rows_min, num_blocks), ROW_UNIT)
    n_rows = num_blocks * r_tile
    n_pad_boxes = n_rows * LANE

    # --- layout: coordinate-major, lane-dense planes -------------------------
    # jnp.pad fuses into the transpose copy fusion (one read+write pass per
    # input here, plus the single HBM read inside the kernel).
    def to_planes(a):
        a = jnp.pad(a, ((0, n_pad_boxes - n), (0, 0)))
        return a.T.reshape(4, n_rows, LANE)

    pred_cm = to_planes(pred)
    tgt_cm = to_planes(tgt)

    partials = pl.pallas_call(
        functools.partial(_diou_kernel, eps=float(eps), n_valid=int(n)),
        out_shape=jax.ShapeDtypeStruct((num_blocks, SUBLANE, LANE),
                                       jnp.float32),
        grid_spec=pltpu.PrefetchScalarGridSpec(
            num_scalar_prefetch=0,
            grid=(num_blocks,),
            in_specs=[
                pl.BlockSpec((4, r_tile, LANE), lambda i: (0, i, 0)),
                pl.BlockSpec((4, r_tile, LANE), lambda i: (0, i, 0)),
            ],
            out_specs=pl.BlockSpec((None, SUBLANE, LANE),
                                   lambda i: (i, 0, 0)),
        ),
        compiler_params=pltpu.CompilerParams(
            dimension_semantics=("parallel",)),
    )(pred_cm, tgt_cm)

    return jnp.sum(partials) / jnp.float32(n)


def _diou_loss_ref(pred, tgt, eps=1e-6):
    pred = pred.reshape(-1, 4).astype(jnp.float32)
    tgt = tgt.reshape(-1, 4).astype(jnp.float32)
    x1, y1, x2, y2 = [pred[:, k] for k in range(4)]
    x1g, y1g, x2g, y2g = [tgt[:, k] for k in range(4)]
    iw = jnp.maximum(jnp.minimum(x2, x2g) - jnp.maximum(x1, x1g), 0.0)
    ih = jnp.maximum(jnp.minimum(y2, y2g) - jnp.maximum(y1, y1g), 0.0)
    inter = iw * ih
    union = (x2 - x1) * (y2 - y1) + (x2g - x1g) * (y2g - y1g) - inter
    iou = inter / (union + eps)
    diag = (jnp.maximum(x2, x2g) - jnp.minimum(x1, x1g)) ** 2 + \
           (jnp.maximum(y2, y2g) - jnp.minimum(y1, y1g)) ** 2 + eps
    cdist = ((x2 + x1) / 2 - (x1g + x2g) / 2) ** 2 + \
            ((y2 + y1) / 2 - (y1g + y2g) / 2) ** 2
    return jnp.mean(1.0 - iou + cdist / diag)


if __name__ == "__main__":
    key = jax.random.PRNGKey(0)
    k1, k2, k3, k4 = jax.random.split(key, 4)
    n_boxes = 200  # not a multiple of 128: exercises padding + in-kernel mask

    p_xy = jax.random.uniform(k1, (n_boxes, 2)) * 10.0
    p_wh = jax.random.uniform(k2, (n_boxes, 2)) * 5.0 + 0.1
    pred_box = jnp.concatenate([p_xy, p_xy + p_wh], axis=-1)

    t_xy = jax.random.uniform(k3, (n_boxes, 2)) * 10.0
    t_wh = jax.random.uniform(k4, (n_boxes, 2)) * 5.0 + 0.1
    target_box = jnp.concatenate([t_xy, t_xy + t_wh], axis=-1)

    loss = diou_loss(pred_box, target_box)
    jax.block_until_ready(loss)

    ref = _diou_loss_ref(pred_box, target_box)
    assert jnp.allclose(loss, ref, rtol=1e-5, atol=1e-5), (loss, ref)

    print("KERNEL_OK")
</pallas_src>

<mosaic_0001>
module attributes {stable_mosaic.version = 11 : i64} {
  func.func @_diou_kernel(%arg0: i32, %arg1: memref<4x64x128xf32, #tpu.memory_space<vmem>>, %arg2: memref<4x64x128xf32, #tpu.memory_space<vmem>>, %arg3: memref<1x8x128xf32, #tpu.memory_space<vmem>>) attributes {dimension_semantics = [#tpu.dimension_semantics<parallel>], iteration_bounds = array<i64: 2>, scalar_prefetch = 0 : i64, scratch_operands = 0 : i64, tpu.core_type = #tpu.core_type<tc>, window_params = [{transform_indices = @transform_0, window_bounds = array<i64: 4, 64, 128>}, {transform_indices = @transform_1, window_bounds = array<i64: 4, 64, 128>}, {transform_indices = @transform_2, window_bounds = array<i64: 1, 8, 128>}]} {
    %c64_i32 = arith.constant 64 : i32
    %0 = arith.muli %arg0, %c64_i32 : i32
    %1 = tpu.iota {dimensions = array<i32: 0>} : vector<8x128xi32>
    %2 = tpu.iota {dimensions = array<i32: 1>} : vector<8x128xi32>
    %cst = arith.constant 0.000000e+00 : f32
    %3 = vector.broadcast %cst : f32 to vector<8x128xf32>
    %c0_i32 = arith.constant 0 : i32
    %c64_i32_0 = arith.constant 64 : i32
    %4 = arith.muli %c0_i32, %c64_i32_0 : i32
    %5 = tpu.assume_multiple %4, 64 : i32
    %c0_i32_1 = arith.constant 0 : i32
    %6 = arith.addi %5, %c0_i32_1 : i32
    %7 = tpu.assume_multiple %6, 8 : i32
    %c0 = arith.constant 0 : index
    %8 = arith.index_cast %7 : i32 to index
    %c0_2 = arith.constant 0 : index
    %9 = vector.load %arg1[%c0, %8, %c0_2] : memref<4x64x128xf32, #tpu.memory_space<vmem>>, vector<1x8x128xf32>
    %10 = vector.shape_cast %9 : vector<1x8x128xf32> to vector<8x128xf32>
    %c1 = arith.constant 1 : index
    %11 = arith.index_cast %7 : i32 to index
    %c0_3 = arith.constant 0 : index
    %12 = vector.load %arg1[%c1, %11, %c0_3] : memref<4x64x128xf32, #tpu.memory_space<vmem>>, vector<1x8x128xf32>
    %13 = vector.shape_cast %12 : vector<1x8x128xf32> to vector<8x128xf32>
    %c2 = arith.constant 2 : index
    %14 = arith.index_cast %7 : i32 to index
    %c0_4 = arith.constant 0 : index
    %15 = vector.load %arg1[%c2, %14, %c0_4] : memref<4x64x128xf32, #tpu.memory_space<vmem>>, vector<1x8x128xf32>
    %16 = vector.shape_cast %15 : vector<1x8x128xf32> to vector<8x128xf32>
    %c3 = arith.constant 3 : index
    %17 = arith.index_cast %7 : i32 to index
    %c0_5 = arith.constant 0 : index
    %18 = vector.load %arg1[%c3, %17, %c0_5] : memref<4x64x128xf32, #tpu.memory_space<vmem>>, vector<1x8x128xf32>
    %19 = vector.shape_cast %18 : vector<1x8x128xf32> to vector<8x128xf32>
    %c0_6 = arith.constant 0 : index
    %20 = arith.index_cast %7 : i32 to index
    %c0_7 = arith.constant 0 : index
    %21 = vector.load %arg2[%c0_6, %20, %c0_7] : memref<4x64x128xf32, #tpu.memory_space<vmem>>, vector<1x8x128xf32>
    %22 = vector.shape_cast %21 : vector<1x8x128xf32> to vector<8x128xf32>
    %c1_8 = arith.constant 1 : index
    %23 = arith.index_cast %7 : i32 to index
    %c0_9 = arith.constant 0 : index
    %24 = vector.load %arg2[%c1_8, %23, %c0_9] : memref<4x64x128xf32, #tpu.memory_space<vmem>>, vector<1x8x128xf32>
    %25 = vector.shape_cast %24 : vector<1x8x128xf32> to vector<8x128xf32>
    %c2_10 = arith.constant 2 : index
    %26 = arith.index_cast %7 : i32 to index
    %c0_11 = arith.constant 0 : index
    %27 = vector.load %arg2[%c2_10, %26, %c0_11] : memref<4x64x128xf32, #tpu.memory_space<vmem>>, vector<1x8x128xf32>
    %28 = vector.shape_cast %27 : vector<1x8x128xf32> to vector<8x128xf32>
    %c3_12 = arith.constant 3 : index
    %29 = arith.index_cast %7 : i32 to index
    %c0_13 = arith.constant 0 : index
    %30 = vector.load %arg2[%c3_12, %29, %c0_13] : memref<4x64x128xf32, #tpu.memory_space<vmem>>, vector<1x8x128xf32>
    %31 = vector.shape_cast %30 : vector<1x8x128xf32> to vector<8x128xf32>
    %32 = arith.minimumf %16, %28 : vector<8x128xf32>
    %33 = arith.maximumf %10, %22 : vector<8x128xf32>
    %34 = arith.subf %32, %33 : vector<8x128xf32>
    %cst_14 = arith.constant 0.000000e+00 : f32
    %35 = vector.broadcast %cst_14 : f32 to vector<8x128xf32>
    %36 = arith.maximumf %34, %35 : vector<8x128xf32>
    %37 = arith.minimumf %19, %31 : vector<8x128xf32>
    %38 = arith.maximumf %13, %25 : vector<8x128xf32>
    %39 = arith.subf %37, %38 : vector<8x128xf32>
    %cst_15 = arith.constant 0.000000e+00 : f32
    %40 = vector.broadcast %cst_15 : f32 to vector<8x128xf32>
    %41 = arith.maximumf %39, %40 : vector<8x128xf32>
    %42 = arith.mulf %36, %41 : vector<8x128xf32>
    %43 = arith.subf %16, %10 : vector<8x128xf32>
    %44 = arith.subf %19, %13 : vector<8x128xf32>
    %45 = arith.mulf %43, %44 : vector<8x128xf32>
    %46 = arith.subf %28, %22 : vector<8x128xf32>
    %47 = arith.subf %31, %25 : vector<8x128xf32>
    %48 = arith.mulf %46, %47 : vector<8x128xf32>
    %49 = arith.addf %45, %48 : vector<8x128xf32>
    %50 = arith.subf %49, %42 : vector<8x128xf32>
    %cst_16 = arith.constant 9.99999997E-7 : f32
    %51 = vector.broadcast %cst_16 : f32 to vector<8x128xf32>
    %52 = arith.addf %50, %51 : vector<8x128xf32>
    %53 = arith.maximumf %16, %28 : vector<8x128xf32>
    %54 = arith.minimumf %10, %22 : vector<8x128xf32>
    %55 = arith.subf %53, %54 : vector<8x128xf32>
    %56 = arith.maximumf %19, %31 : vector<8x128xf32>
    %57 = arith.minimumf %13, %25 : vector<8x128xf32>
    %58 = arith.subf %56, %57 : vector<8x128xf32>
    %59 = arith.mulf %55, %55 : vector<8x128xf32>
    %60 = arith.mulf %58, %58 : vector<8x128xf32>
    %61 = arith.addf %59, %60 : vector<8x128xf32>
    %cst_17 = arith.constant 9.99999997E-7 : f32
    %62 = vector.broadcast %cst_17 : f32 to vector<8x128xf32>
    %63 = arith.addf %61, %62 : vector<8x128xf32>
    %64 = arith.addf %10, %16 : vector<8x128xf32>
    %65 = arith.addf %22, %28 : vector<8x128xf32>
    %66 = arith.subf %64, %65 : vector<8x128xf32>
    %67 = arith.addf %13, %19 : vector<8x128xf32>
    %68 = arith.addf %25, %31 : vector<8x128xf32>
    %69 = arith.subf %67, %68 : vector<8x128xf32>
    %70 = arith.mulf %66, %66 : vector<8x128xf32>
    %71 = arith.mulf %69, %69 : vector<8x128xf32>
    %72 = arith.addf %70, %71 : vector<8x128xf32>
    %cst_18 = arith.constant 2.500000e-01 : f32
    %73 = vector.broadcast %cst_18 : f32 to vector<8x128xf32>
    %74 = arith.mulf %73, %72 : vector<8x128xf32>
    %75 = arith.mulf %74, %52 : vector<8x128xf32>
    %76 = arith.mulf %42, %63 : vector<8x128xf32>
    %77 = arith.subf %75, %76 : vector<8x128xf32>
    %78 = arith.mulf %52, %63 : vector<8x128xf32>
    %79 = arith.divf %77, %78 : vector<8x128xf32>
    %cst_19 = arith.constant 1.000000e+00 : f32
    %80 = vector.broadcast %cst_19 : f32 to vector<8x128xf32>
    %81 = arith.addf %80, %79 : vector<8x128xf32>
    %82 = arith.addi %0, %7 : i32
    %83 = vector.broadcast %82 : i32 to vector<8x128xi32>
    %84 = arith.addi %83, %1 : vector<8x128xi32>
    %c128_i32 = arith.constant 128 : i32
    %85 = vector.broadcast %c128_i32 : i32 to vector<8x128xi32>
    %86 = arith.muli %84, %85 : vector<8x128xi32>
    %87 = arith.addi %86, %2 : vector<8x128xi32>
    %c200_i32 = arith.constant 200 : i32
    %88 = vector.broadcast %c200_i32 : i32 to vector<8x128xi32>
    %89 = arith.cmpi slt, %87, %88 : vector<8x128xi32>
    %cst_20 = arith.constant 0.000000e+00 : f32
    %90 = vector.broadcast %cst_20 : f32 to vector<8x128xf32>
    %91 = arith.select %89, %81, %90 : vector<8x128xi1>, vector<8x128xf32>
    %92 = arith.addf %3, %91 : vector<8x128xf32>
    %c8_i32 = arith.constant 8 : i32
    %93 = arith.addi %5, %c8_i32 : i32
    %94 = tpu.assume_multiple %93, 8 : i32
    %c0_21 = arith.constant 0 : index
    %95 = arith.index_cast %94 : i32 to index
    %c0_22 = arith.constant 0 : index
    %96 = vector.load %arg1[%c0_21, %95, %c0_22] : memref<4x64x128xf32, #tpu.memory_space<vmem>>, vector<1x8x128xf32>
    %97 = vector.shape_cast %96 : vector<1x8x128xf32> to vector<8x128xf32>
    %c1_23 = arith.constant 1 : index
    %98 = arith.index_cast %94 : i32 to index
    %c0_24 = arith.constant 0 : index
    %99 = vector.load %arg1[%c1_23, %98, %c0_24] : memref<4x64x128xf32, #tpu.memory_space<vmem>>, vector<1x8x128xf32>
    %100 = vector.shape_cast %99 : vector<1x8x128xf32> to vector<8x128xf32>
    %c2_25 = arith.constant 2 : index
    %101 = arith.index_cast %94 : i32 to index
    %c0_26 = arith.constant 0 : index
    %102 = vector.load %arg1[%c2_25, %101, %c0_26] : memref<4x64x128xf32, #tpu.memory_space<vmem>>, vector<1x8x128xf32>
    %103 = vector.shape_cast %102 : vector<1x8x128xf32> to vector<8x128xf32>
    %c3_27 = arith.constant 3 : index
    %104 = arith.index_cast %94 : i32 to index
    %c0_28 = arith.constant 0 : index
    %105 = vector.load %arg1[%c3_27, %104, %c0_28] : memref<4x64x128xf32, #tpu.memory_space<vmem>>, vector<1x8x128xf32>
    %106 = vector.shape_cast %105 : vector<1x8x128xf32> to vector<8x128xf32>
    %c0_29 = arith.constant 0 : index
    %107 = arith.index_cast %94 : i32 to index
    %c0_30 = arith.constant 0 : index
    %108 = vector.load %arg2[%c0_29, %107, %c0_30] : memref<4x64x128xf32, #tpu.memory_space<vmem>>, vector<1x8x128xf32>
    %109 = vector.shape_cast %108 : vector<1x8x128xf32> to vector<8x128xf32>
    %c1_31 = arith.constant 1 : index
    %110 = arith.index_cast %94 : i32 to index
    %c0_32 = arith.constant 0 : index
    %111 = vector.load %arg2[%c1_31, %110, %c0_32] : memref<4x64x128xf32, #tpu.memory_space<vmem>>, vector<1x8x128xf32>
    %112 = vector.shape_cast %111 : vector<1x8x128xf32> to vector<8x128xf32>
    %c2_33 = arith.constant 2 : index
    %113 = arith.index_cast %94 : i32 to index
    %c0_34 = arith.constant 0 : index
    %114 = vector.load %arg2[%c2_33, %113, %c0_34] : memref<4x64x128xf32, #tpu.memory_space<vmem>>, vector<1x8x128xf32>
    %115 = vector.shape_cast %114 : vector<1x8x128xf32> to vector<8x128xf32>
    %c3_35 = arith.constant 3 : index
    %116 = arith.index_cast %94 : i32 to index
    %c0_36 = arith.constant 0 : index
    %117 = vector.load %arg2[%c3_35, %116, %c0_36] : memref<4x64x128xf32, #tpu.memory_space<vmem>>, vector<1x8x128xf32>
    %118 = vector.shape_cast %117 : vector<1x8x128xf32> to vector<8x128xf32>
    %119 = arith.minimumf %103, %115 : vector<8x128xf32>
    %120 = arith.maximumf %97, %109 : vector<8x128xf32>
    %121 = arith.subf %119, %120 : vector<8x128xf32>
    %cst_37 = arith.constant 0.000000e+00 : f32
    %122 = vector.broadcast %cst_37 : f32 to vector<8x128xf32>
    %123 = arith.maximumf %121, %122 : vector<8x128xf32>
    %124 = arith.minimumf %106, %118 : vector<8x128xf32>
    %125 = arith.maximumf %100, %112 : vector<8x128xf32>
    %126 = arith.subf %124, %125 : vector<8x128xf32>
    %cst_38 = arith.constant 0.000000e+00 : f32
    %127 = vector.broadcast %cst_38 : f32 to vector<8x128xf32>
    %128 = arith.maximumf %126, %127 : vector<8x128xf32>
    %129 = arith.mulf %123, %128 : vector<8x128xf32>
    %130 = arith.subf %103, %97 : vector<8x128xf32>
    %131 = arith.subf %106, %100 : vector<8x128xf32>
    %132 = arith.mulf %130, %131 : vector<8x128xf32>
    %133 = arith.subf %115, %109 : vector<8x128xf32>
    %134 = arith.subf %118, %112 : vector<8x128xf32>
    %135 = arith.mulf %133, %134 : vector<8x128xf32>
    %136 = arith.addf %132, %135 : vector<8x128xf32>
    %137 = arith.subf %136, %129 : vector<8x128xf32>
    %cst_39 = arith.constant 9.99999997E-7 : f32
    %138 = vector.broadcast %cst_39 : f32 to vector<8x128xf32>
    %139 = arith.addf %137, %138 : vector<8x128xf32>
    %140 = arith.maximumf %103, %115 : vector<8x128xf32>
    %141 = arith.minimumf %97, %109 : vector<8x128xf32>
    %142 = arith.subf %140, %141 : vector<8x128xf32>
    %143 = arith.maximumf %106, %118 : vector<8x128xf32>
    %144 = arith.minimumf %100, %112 : vector<8x128xf32>
    %145 = arith.subf %143, %144 : vector<8x128xf32>
    %146 = arith.mulf %142, %142 : vector<8x128xf32>
    %147 = arith.mulf %145, %145 : vector<8x128xf32>
    %148 = arith.addf %146, %147 : vector<8x128xf32>
    %cst_40 = arith.constant 9.99999997E-7 : f32
    %149 = vector.broadcast %cst_40 : f32 to vector<8x128xf32>
    %150 = arith.addf %148, %149 : vector<8x128xf32>
    %151 = arith.addf %97, %103 : vector<8x128xf32>
    %152 = arith.addf %109, %115 : vector<8x128xf32>
    %153 = arith.subf %151, %152 : vector<8x128xf32>
    %154 = arith.addf %100, %106 : vector<8x128xf32>
    %155 = arith.addf %112, %118 : vector<8x128xf32>
    %156 = arith.subf %154, %155 : vector<8x128xf32>
    %157 = arith.mulf %153, %153 : vector<8x128xf32>
    %158 = arith.mulf %156, %156 : vector<8x128xf32>
    %159 = arith.addf %157, %158 : vector<8x128xf32>
    %cst_41 = arith.constant 2.500000e-01 : f32
    %160 = vector.broadcast %cst_41 : f32 to vector<8x128xf32>
    %161 = arith.mulf %160, %159 : vector<8x128xf32>
    %162 = arith.mulf %161, %139 : vector<8x128xf32>
    %163 = arith.mulf %129, %150 : vector<8x128xf32>
    %164 = arith.subf %162, %163 : vector<8x128xf32>
    %165 = arith.mulf %139, %150 : vector<8x128xf32>
    %166 = arith.divf %164, %165 : vector<8x128xf32>
    %cst_42 = arith.constant 1.000000e+00 : f32
    %167 = vector.broadcast %cst_42 : f32 to vector<8x128xf32>
    %168 = arith.addf %167, %166 : vector<8x128xf32>
    %169 = arith.addi %0, %94 : i32
    %170 = vector.broadcast %169 : i32 to vector<8x128xi32>
    %171 = arith.addi %170, %1 : vector<8x128xi32>
    %c128_i32_43 = arith.constant 128 : i32
    %172 = vector.broadcast %c128_i32_43 : i32 to vector<8x128xi32>
    %173 = arith.muli %171, %172 : vector<8x128xi32>
    %174 = arith.addi %173, %2 : vector<8x128xi32>
    %c200_i32_44 = arith.constant 200 : i32
    %175 = vector.broadcast %c200_i32_44 : i32 to vector<8x128xi32>
    %176 = arith.cmpi slt, %174, %175 : vector<8x128xi32>
    %cst_45 = arith.constant 0.000000e+00 : f32
    %177 = vector.broadcast %cst_45 : f32 to vector<8x128xf32>
    %178 = arith.select %176, %168, %177 : vector<8x128xi1>, vector<8x128xf32>
    %179 = arith.addf %92, %178 : vector<8x128xf32>
    %c16_i32 = arith.constant 16 : i32
    %180 = arith.addi %5, %c16_i32 : i32
    %181 = tpu.assume_multiple %180, 8 : i32
    %c0_46 = arith.constant 0 : index
    %182 = arith.index_cast %181 : i32 to index
    %c0_47 = arith.constant 0 : index
    %183 = vector.load %arg1[%c0_46, %182, %c0_47] : memref<4x64x128xf32, #tpu.memory_space<vmem>>, vector<1x8x128xf32>
    %184 = vector.shape_cast %183 : vector<1x8x128xf32> to vector<8x128xf32>
    %c1_48 = arith.constant 1 : index
    %185 = arith.index_cast %181 : i32 to index
    %c0_49 = arith.constant 0 : index
    %186 = vector.load %arg1[%c1_48, %185, %c0_49] : memref<4x64x128xf32, #tpu.memory_space<vmem>>, vector<1x8x128xf32>
    %187 = vector.shape_cast %186 : vector<1x8x128xf32> to vector<8x128xf32>
    %c2_50 = arith.constant 2 : index
    %188 = arith.index_cast %181 : i32 to index
    %c0_51 = arith.constant 0 : index
    %189 = vector.load %arg1[%c2_50, %188, %c0_51] : memref<4x64x128xf32, #tpu.memory_space<vmem>>, vector<1x8x128xf32>
    %190 = vector.shape_cast %189 : vector<1x8x128xf32> to vector<8x128xf32>
    %c3_52 = arith.constant 3 : index
    %191 = arith.index_cast %181 : i32 to index
    %c0_53 = arith.constant 0 : index
    %192 = vector.load %arg1[%c3_52, %191, %c0_53] : memref<4x64x128xf32, #tpu.memory_space<vmem>>, vector<1x8x128xf32>
    %193 = vector.shape_cast %192 : vector<1x8x128xf32> to vector<8x128xf32>
    %c0_54 = arith.constant 0 : index
    %194 = arith.index_cast %181 : i32 to index
    %c0_55 = arith.constant 0 : index
    %195 = vector.load %arg2[%c0_54, %194, %c0_55] : memref<4x64x128xf32, #tpu.memory_space<vmem>>, vector<1x8x128xf32>
    %196 = vector.shape_cast %195 : vector<1x8x128xf32> to vector<8x128xf32>
    %c1_56 = arith.constant 1 : index
    %197 = arith.index_cast %181 : i32 to index
    %c0_57 = arith.constant 0 : index
    %198 = vector.load %arg2[%c1_56, %197, %c0_57] : memref<4x64x128xf32, #tpu.memory_space<vmem>>, vector<1x8x128xf32>
    %199 = vector.shape_cast %198 : vector<1x8x128xf32> to vector<8x128xf32>
    %c2_58 = arith.constant 2 : index
    %200 = arith.index_cast %181 : i32 to index
    %c0_59 = arith.constant 0 : index
    %201 = vector.load %arg2[%c2_58, %200, %c0_59] : memref<4x64x128xf32, #tpu.memory_space<vmem>>, vector<1x8x128xf32>
    %202 = vector.shape_cast %201 : vector<1x8x128xf32> to vector<8x128xf32>
    %c3_60 = arith.constant 3 : index
    %203 = arith.index_cast %181 : i32 to index
    %c0_61 = arith.constant 0 : index
    %204 = vector.load %arg2[%c3_60, %203, %c0_61] : memref<4x64x128xf32, #tpu.memory_space<vmem>>, vector<1x8x128xf32>
    %205 = vector.shape_cast %204 : vector<1x8x128xf32> to vector<8x128xf32>
    %206 = arith.minimumf %190, %202 : vector<8x128xf32>
    %207 = arith.maximumf %184, %196 : vector<8x128xf32>
    %208 = arith.subf %206, %207 : vector<8x128xf32>
    %cst_62 = arith.constant 0.000000e+00 : f32
    %209 = vector.broadcast %cst_62 : f32 to vector<8x128xf32>
    %210 = arith.maximumf %208, %209 : vector<8x128xf32>
    %211 = arith.minimumf %193, %205 : vector<8x128xf32>
    %212 = arith.maximumf %187, %199 : vector<8x128xf32>
    %213 = arith.subf %211, %212 : vector<8x128xf32>
    %cst_63 = arith.constant 0.000000e+00 : f32
    %214 = vector.broadcast %cst_63 : f32 to vector<8x128xf32>
    %215 = arith.maximumf %213, %214 : vector<8x128xf32>
    %216 = arith.mulf %210, %215 : vector<8x128xf32>
    %217 = arith.subf %190, %184 : vector<8x128xf32>
    %218 = arith.subf %193, %187 : vector<8x128xf32>
    %219 = arith.mulf %217, %218 : vector<8x128xf32>
    %220 = arith.subf %202, %196 : vector<8x128xf32>
    %221 = arith.subf %205, %199 : vector<8x128xf32>
    %222 = arith.mulf %220, %221 : vector<8x128xf32>
    %223 = arith.addf %219, %222 : vector<8x128xf32>
    %224 = arith.subf %223, %216 : vector<8x128xf32>
    %cst_64 = arith.constant 9.99999997E-7 : f32
    %225 = vector.broadcast %cst_64 : f32 to vector<8x128xf32>
    %226 = arith.addf %224, %225 : vector<8x128xf32>
    %227 = arith.maximumf %190, %202 : vector<8x128xf32>
    %228 = arith.minimumf %184, %196 : vector<8x128xf32>
    %229 = arith.subf %227, %228 : vector<8x128xf32>
    %230 = arith.maximumf %193, %205 : vector<8x128xf32>
    %231 = arith.minimumf %187, %199 : vector<8x128xf32>
    %232 = arith.subf %230, %231 : vector<8x128xf32>
    %233 = arith.mulf %229, %229 : vector<8x128xf32>
    %234 = arith.mulf %232, %232 : vector<8x128xf32>
    %235 = arith.addf %233, %234 : vector<8x128xf32>
    %cst_65 = arith.constant 9.99999997E-7 : f32
    %236 = vector.broadcast %cst_65 : f32 to vector<8x128xf32>
    %237 = arith.addf %235, %236 : vector<8x128xf32>
    %238 = arith.addf %184, %190 : vector<8x128xf32>
    %239 = arith.addf %196, %202 : vector<8x128xf32>
    %240 = arith.subf %238, %239 : vector<8x128xf32>
    %241 = arith.addf %187, %193 : vector<8x128xf32>
    %242 = arith.addf %199, %205 : vector<8x128xf32>
    %243 = arith.subf %241, %242 : vector<8x128xf32>
    %244 = arith.mulf %240, %240 : vector<8x128xf32>
    %245 = arith.mulf %243, %243 : vector<8x128xf32>
    %246 = arith.addf %244, %245 : vector<8x128xf32>
    %cst_66 = arith.constant 2.500000e-01 : f32
    %247 = vector.broadcast %cst_66 : f32 to vector<8x128xf32>
    %248 = arith.mulf %247, %246 : vector<8x128xf32>
    %249 = arith.mulf %248, %226 : vector<8x128xf32>
    %250 = arith.mulf %216, %237 : vector<8x128xf32>
    %251 = arith.subf %249, %250 : vector<8x128xf32>
    %252 = arith.mulf %226, %237 : vector<8x128xf32>
    %253 = arith.divf %251, %252 : vector<8x128xf32>
    %cst_67 = arith.constant 1.000000e+00 : f32
    %254 = vector.broadcast %cst_67 : f32 to vector<8x128xf32>
    %255 = arith.addf %254, %253 : vector<8x128xf32>
    %256 = arith.addi %0, %181 : i32
    %257 = vector.broadcast %256 : i32 to vector<8x128xi32>
    %258 = arith.addi %257, %1 : vector<8x128xi32>
    %c128_i32_68 = arith.constant 128 : i32
    %259 = vector.broadcast %c128_i32_68 : i32 to vector<8x128xi32>
    %260 = arith.muli %258, %259 : vector<8x128xi32>
    %261 = arith.addi %260, %2 : vector<8x128xi32>
    %c200_i32_69 = arith.constant 200 : i32
    %262 = vector.broadcast %c200_i32_69 : i32 to vector<8x128xi32>
    %263 = arith.cmpi slt, %261, %262 : vector<8x128xi32>
    %cst_70 = arith.constant 0.000000e+00 : f32
    %264 = vector.broadcast %cst_70 : f32 to vector<8x128xf32>
    %265 = arith.select %263, %255, %264 : vector<8x128xi1>, vector<8x128xf32>
    %266 = arith.addf %179, %265 : vector<8x128xf32>
    %c24_i32 = arith.constant 24 : i32
    %267 = arith.addi %5, %c24_i32 : i32
    %268 = tpu.assume_multiple %267, 8 : i32
    %c0_71 = arith.constant 0 : index
    %269 = arith.index_cast %268 : i32 to index
    %c0_72 = arith.constant 0 : index
    %270 = vector.load %arg1[%c0_71, %269, %c0_72] : memref<4x64x128xf32, #tpu.memory_space<vmem>>, vector<1x8x128xf32>
    %271 = vector.shape_cast %270 : vector<1x8x128xf32> to vector<8x128xf32>
    %c1_73 = arith.constant 1 : index
    %272 = arith.index_cast %268 : i32 to index
    %c0_74 = arith.constant 0 : index
    %273 = vector.load %arg1[%c1_73, %272, %c0_74] : memref<4x64x128xf32, #tpu.memory_space<vmem>>, vector<1x8x128xf32>
    %274 = vector.shape_cast %273 : vector<1x8x128xf32> to vector<8x128xf32>
    %c2_75 = arith.constant 2 : index
    %275 = arith.index_cast %268 : i32 to index
    %c0_76 = arith.constant 0 : index
    %276 = vector.load %arg1[%c2_75, %275, %c0_76] : memref<4x64x128xf32, #tpu.memory_space<vmem>>, vector<1x8x128xf32>
    %277 = vector.shape_cast %276 : vector<1x8x128xf32> to vector<8x128xf32>
    %c3_77 = arith.constant 3 : index
    %278 = arith.index_cast %268 : i32 to index
    %c0_78 = arith.constant 0 : index
    %279 = vector.load %arg1[%c3_77, %278, %c0_78] : memref<4x64x128xf32, #tpu.memory_space<vmem>>, vector<1x8x128xf32>
    %280 = vector.shape_cast %279 : vector<1x8x128xf32> to vector<8x128xf32>
    %c0_79 = arith.constant 0 : index
    %281 = arith.index_cast %268 : i32 to index
    %c0_80 = arith.constant 0 : index
    %282 = vector.load %arg2[%c0_79, %281, %c0_80] : memref<4x64x128xf32, #tpu.memory_space<vmem>>, vector<1x8x128xf32>
    %283 = vector.shape_cast %282 : vector<1x8x128xf32> to vector<8x128xf32>
    %c1_81 = arith.constant 1 : index
    %284 = arith.index_cast %268 : i32 to index
    %c0_82 = arith.constant 0 : index
    %285 = vector.load %arg2[%c1_81, %284, %c0_82] : memref<4x64x128xf32, #tpu.memory_space<vmem>>, vector<1x8x128xf32>
    %286 = vector.shape_cast %285 : vector<1x8x128xf32> to vector<8x128xf32>
    %c2_83 = arith.constant 2 : index
    %287 = arith.index_cast %268 : i32 to index
    %c0_84 = arith.constant 0 : index
    %288 = vector.load %arg2[%c2_83, %287, %c0_84] : memref<4x64x128xf32, #tpu.memory_space<vmem>>, vector<1x8x128xf32>
    %289 = vector.shape_cast %288 : vector<1x8x128xf32> to vector<8x128xf32>
    %c3_85 = arith.constant 3 : index
    %290 = arith.index_cast %268 : i32 to index
    %c0_86 = arith.constant 0 : index
    %291 = vector.load %arg2[%c3_85, %290, %c0_86] : memref<4x64x128xf32, #tpu.memory_space<vmem>>, vector<1x8x128xf32>
    %292 = vector.shape_cast %291 : vector<1x8x128xf32> to vector<8x128xf32>
    %293 = arith.minimumf %277, %289 : vector<8x128xf32>
    %294 = arith.maximumf %271, %283 : vector<8x128xf32>
    %295 = arith.subf %293, %294 : vector<8x128xf32>
    %cst_87 = arith.constant 0.000000e+00 : f32
    %296 = vector.broadcast %cst_87 : f32 to vector<8x128xf32>
    %297 = arith.maximumf %295, %296 : vector<8x128xf32>
    %298 = arith.minimumf %280, %292 : vector<8x128xf32>
    %299 = arith.maximumf %274, %286 : vector<8x128xf32>
    %300 = arith.subf %298, %299 : vector<8x128xf32>
    %cst_88 = arith.constant 0.000000e+00 : f32
    %301 = vector.broadcast %cst_88 : f32 to vector<8x128xf32>
    %302 = arith.maximumf %300, %301 : vector<8x128xf32>
    %303 = arith.mulf %297, %302 : vector<8x128xf32>
    %304 = arith.subf %277, %271 : vector<8x128xf32>
    %305 = arith.subf %280, %274 : vector<8x128xf32>
    %306 = arith.mulf %304, %305 : vector<8x128xf32>
    %307 = arith.subf %289, %283 : vector<8x128xf32>
    %308 = arith.subf %292, %286 : vector<8x128xf32>
    %309 = arith.mulf %307, %308 : vector<8x128xf32>
    %310 = arith.addf %306, %309 : vector<8x128xf32>
    %311 = arith.subf %310, %303 : vector<8x128xf32>
    %cst_89 = arith.constant 9.99999997E-7 : f32
    %312 = vector.broadcast %cst_89 : f32 to vector<8x128xf32>
    %313 = arith.addf %311, %312 : vector<8x128xf32>
    %314 = arith.maximumf %277, %289 : vector<8x128xf32>
    %315 = arith.minimumf %271, %283 : vector<8x128xf32>
    %316 = arith.subf %314, %315 : vector<8x128xf32>
    %317 = arith.maximumf %280, %292 : vector<8x128xf32>
    %318 = arith.minimumf %274, %286 : vector<8x128xf32>
    %319 = arith.subf %317, %318 : vector<8x128xf32>
    %320 = arith.mulf %316, %316 : vector<8x128xf32>
    %321 = arith.mulf %319, %319 : vector<8x128xf32>
    %322 = arith.addf %320, %321 : vector<8x128xf32>
    %cst_90 = arith.constant 9.99999997E-7 : f32
    %323 = vector.broadcast %cst_90 : f32 to vector<8x128xf32>
    %324 = arith.addf %322, %323 : vector<8x128xf32>
    %325 = arith.addf %271, %277 : vector<8x128xf32>
    %326 = arith.addf %283, %289 : vector<8x128xf32>
    %327 = arith.subf %325, %326 : vector<8x128xf32>
    %328 = arith.addf %274, %280 : vector<8x128xf32>
    %329 = arith.addf %286, %292 : vector<8x128xf32>
    %330 = arith.subf %328, %329 : vector<8x128xf32>
    %331 = arith.mulf %327, %327 : vector<8x128xf32>
    %332 = arith.mulf %330, %330 : vector<8x128xf32>
    %333 = arith.addf %331, %332 : vector<8x128xf32>
    %cst_91 = arith.constant 2.500000e-01 : f32
    %334 = vector.broadcast %cst_91 : f32 to vector<8x128xf32>
    %335 = arith.mulf %334, %333 : vector<8x128xf32>
    %336 = arith.mulf %335, %313 : vector<8x128xf32>
    %337 = arith.mulf %303, %324 : vector<8x128xf32>
    %338 = arith.subf %336, %337 : vector<8x128xf32>
    %339 = arith.mulf %313, %324 : vector<8x128xf32>
    %340 = arith.divf %338, %339 : vector<8x128xf32>
    %cst_92 = arith.constant 1.000000e+00 : f32
    %341 = vector.broadcast %cst_92 : f32 to vector<8x128xf32>
    %342 = arith.addf %341, %340 : vector<8x128xf32>
    %343 = arith.addi %0, %268 : i32
    %344 = vector.broadcast %343 : i32 to vector<8x128xi32>
    %345 = arith.addi %344, %1 : vector<8x128xi32>
    %c128_i32_93 = arith.constant 128 : i32
    %346 = vector.broadcast %c128_i32_93 : i32 to vector<8x128xi32>
    %347 = arith.muli %345, %346 : vector<8x128xi32>
    %348 = arith.addi %347, %2 : vector<8x128xi32>
    %c200_i32_94 = arith.constant 200 : i32
    %349 = vector.broadcast %c200_i32_94 : i32 to vector<8x128xi32>
    %350 = arith.cmpi slt, %348, %349 : vector<8x128xi32>
    %cst_95 = arith.constant 0.000000e+00 : f32
    %351 = vector.broadcast %cst_95 : f32 to vector<8x128xf32>
    %352 = arith.select %350, %342, %351 : vector<8x128xi1>, vector<8x128xf32>
    %353 = arith.addf %266, %352 : vector<8x128xf32>
    %c32_i32 = arith.constant 32 : i32
    %354 = arith.addi %5, %c32_i32 : i32
    %355 = tpu.assume_multiple %354, 8 : i32
    %c0_96 = arith.constant 0 : index
    %356 = arith.index_cast %355 : i32 to index
    %c0_97 = arith.constant 0 : index
    %357 = vector.load %arg1[%c0_96, %356, %c0_97] : memref<4x64x128xf32, #tpu.memory_space<vmem>>, vector<1x8x128xf32>
    %358 = vector.shape_cast %357 : vector<1x8x128xf32> to vector<8x128xf32>
    %c1_98 = arith.constant 1 : index
    %359 = arith.index_cast %355 : i32 to index
    %c0_99 = arith.constant 0 : index
    %360 = vector.load %arg1[%c1_98, %359, %c0_99] : memref<4x64x128xf32, #tpu.memory_space<vmem>>, vector<1x8x128xf32>
    %361 = vector.shape_cast %360 : vector<1x8x128xf32> to vector<8x128xf32>
    %c2_100 = arith.constant 2 : index
    %362 = arith.index_cast %355 : i32 to index
    %c0_101 = arith.constant 0 : index
    %363 = vector.load %arg1[%c2_100, %362, %c0_101] : memref<4x64x128xf32, #tpu.memory_space<vmem>>, vector<1x8x128xf32>
    %364 = vector.shape_cast %363 : vector<1x8x128xf32> to vector<8x128xf32>
    %c3_102 = arith.constant 3 : index
    %365 = arith.index_cast %355 : i32 to index
    %c0_103 = arith.constant 0 : index
    %366 = vector.load %arg1[%c3_102, %365, %c0_103] : memref<4x64x128xf32, #tpu.memory_space<vmem>>, vector<1x8x128xf32>
    %367 = vector.shape_cast %366 : vector<1x8x128xf32> to vector<8x128xf32>
    %c0_104 = arith.constant 0 : index
    %368 = arith.index_cast %355 : i32 to index
    %c0_105 = arith.constant 0 : index
    %369 = vector.load %arg2[%c0_104, %368, %c0_105] : memref<4x64x128xf32, #tpu.memory_space<vmem>>, vector<1x8x128xf32>
    %370 = vector.shape_cast %369 : vector<1x8x128xf32> to vector<8x128xf32>
    %c1_106 = arith.constant 1 : index
    %371 = arith.index_cast %355 : i32 to index
    %c0_107 = arith.constant 0 : index
    %372 = vector.load %arg2[%c1_106, %371, %c0_107] : memref<4x64x128xf32, #tpu.memory_space<vmem>>, vector<1x8x128xf32>
    %373 = vector.shape_cast %372 : vector<1x8x128xf32> to vector<8x128xf32>
    %c2_108 = arith.constant 2 : index
    %374 = arith.index_cast %355 : i32 to index
    %c0_109 = arith.constant 0 : index
    %375 = vector.load %arg2[%c2_108, %374, %c0_109] : memref<4x64x128xf32, #tpu.memory_space<vmem>>, vector<1x8x128xf32>
    %376 = vector.shape_cast %375 : vector<1x8x128xf32> to vector<8x128xf32>
    %c3_110 = arith.constant 3 : index
    %377 = arith.index_cast %355 : i32 to index
    %c0_111 = arith.constant 0 : index
    %378 = vector.load %arg2[%c3_110, %377, %c0_111] : memref<4x64x128xf32, #tpu.memory_space<vmem>>, vector<1x8x128xf32>
    %379 = vector.shape_cast %378 : vector<1x8x128xf32> to vector<8x128xf32>
    %380 = arith.minimumf %364, %376 : vector<8x128xf32>
    %381 = arith.maximumf %358, %370 : vector<8x128xf32>
    %382 = arith.subf %380, %381 : vector<8x128xf32>
    %cst_112 = arith.constant 0.000000e+00 : f32
    %383 = vector.broadcast %cst_112 : f32 to vector<8x128xf32>
    %384 = arith.maximumf %382, %383 : vector<8x128xf32>
    %385 = arith.minimumf %367, %379 : vector<8x128xf32>
    %386 = arith.maximumf %361, %373 : vector<8x128xf32>
    %387 = arith.subf %385, %386 : vector<8x128xf32>
    %cst_113 = arith.constant 0.000000e+00 : f32
    %388 = vector.broadcast %cst_113 : f32 to vector<8x128xf32>
    %389 = arith.maximumf %387, %388 : vector<8x128xf32>
    %390 = arith.mulf %384, %389 : vector<8x128xf32>
    %391 = arith.subf %364, %358 : vector<8x128xf32>
    %392 = arith.subf %367, %361 : vector<8x128xf32>
    %393 = arith.mulf %391, %392 : vector<8x128xf32>
    %394 = arith.subf %376, %370 : vector<8x128xf32>
    %395 = arith.subf %379, %373 : vector<8x128xf32>
    %396 = arith.mulf %394, %395 : vector<8x128xf32>
    %397 = arith.addf %393, %396 : vector<8x128xf32>
    %398 = arith.subf %397, %390 : vector<8x128xf32>
    %cst_114 = arith.constant 9.99999997E-7 : f32
    %399 = vector.broadcast %cst_114 : f32 to vector<8x128xf32>
    %400 = arith.addf %398, %399 : vector<8x128xf32>
    %401 = arith.maximumf %364, %376 : vector<8x128xf32>
    %402 = arith.minimumf %358, %370 : vector<8x128xf32>
    %403 = arith.subf %401, %402 : vector<8x128xf32>
    %404 = arith.maximumf %367, %379 : vector<8x128xf32>
    %405 = arith.minimumf %361, %373 : vector<8x128xf32>
    %406 = arith.subf %404, %405 : vector<8x128xf32>
    %407 = arith.mulf %403, %403 : vector<8x128xf32>
    %408 = arith.mulf %406, %406 : vector<8x128xf32>
    %409 = arith.addf %407, %408 : vector<8x128xf32>
    %cst_115 = arith.constant 9.99999997E-7 : f32
    %410 = vector.broadcast %cst_115 : f32 to vector<8x128xf32>
    %411 = arith.addf %409, %410 : vector<8x128xf32>
    %412 = arith.addf %358, %364 : vector<8x128xf32>
    %413 = arith.addf %370, %376 : vector<8x128xf32>
    %414 = arith.subf %412, %413 : vector<8x128xf32>
    %415 = arith.addf %361, %367 : vector<8x128xf32>
    %416 = arith.addf %373, %379 : vector<8x128xf32>
    %417 = arith.subf %415, %416 : vector<8x128xf32>
    %418 = arith.mulf %414, %414 : vector<8x128xf32>
    %419 = arith.mulf %417, %417 : vector<8x128xf32>
    %420 = arith.addf %418, %419 : vector<8x128xf32>
    %cst_116 = arith.constant 2.500000e-01 : f32
    %421 = vector.broadcast %cst_116 : f32 to vector<8x128xf32>
    %422 = arith.mulf %421, %420 : vector<8x128xf32>
    %423 = arith.mulf %422, %400 : vector<8x128xf32>
    %424 = arith.mulf %390, %411 : vector<8x128xf32>
    %425 = arith.subf %423, %424 : vector<8x128xf32>
    %426 = arith.mulf %400, %411 : vector<8x128xf32>
    %427 = arith.divf %425, %426 : vector<8x128xf32>
    %cst_117 = arith.constant 1.000000e+00 : f32
    %428 = vector.broadcast %cst_117 : f32 to vector<8x128xf32>
    %429 = arith.addf %428, %427 : vector<8x128xf32>
    %430 = arith.addi %0, %355 : i32
    %431 = vector.broadcast %430 : i32 to vector<8x128xi32>
    %432 = arith.addi %431, %1 : vector<8x128xi32>
    %c128_i32_118 = arith.constant 128 : i32
    %433 = vector.broadcast %c128_i32_118 : i32 to vector<8x128xi32>
    %434 = arith.muli %432, %433 : vector<8x128xi32>
    %435 = arith.addi %434, %2 : vector<8x128xi32>
    %c200_i32_119 = arith.constant 200 : i32
    %436 = vector.broadcast %c200_i32_119 : i32 to vector<8x128xi32>
    %437 = arith.cmpi slt, %435, %436 : vector<8x128xi32>
    %cst_120 = arith.constant 0.000000e+00 : f32
    %438 = vector.broadcast %cst_120 : f32 to vector<8x128xf32>
    %439 = arith.select %437, %429, %438 : vector<8x128xi1>, vector<8x128xf32>
    %440 = arith.addf %353, %439 : vector<8x128xf32>
    %c40_i32 = arith.constant 40 : i32
    %441 = arith.addi %5, %c40_i32 : i32
    %442 = tpu.assume_multiple %441, 8 : i32
    %c0_121 = arith.constant 0 : index
    %443 = arith.index_cast %442 : i32 to index
    %c0_122 = arith.constant 0 : index
    %444 = vector.load %arg1[%c0_121, %443, %c0_122] : memref<4x64x128xf32, #tpu.memory_space<vmem>>, vector<1x8x128xf32>
    %445 = vector.shape_cast %444 : vector<1x8x128xf32> to vector<8x128xf32>
    %c1_123 = arith.constant 1 : index
    %446 = arith.index_cast %442 : i32 to index
    %c0_124 = arith.constant 0 : index
    %447 = vector.load %arg1[%c1_123, %446, %c0_124] : memref<4x64x128xf32, #tpu.memory_space<vmem>>, vector<1x8x128xf32>
    %448 = vector.shape_cast %447 : vector<1x8x128xf32> to vector<8x128xf32>
    %c2_125 = arith.constant 2 : index
    %449 = arith.index_cast %442 : i32 to index
    %c0_126 = arith.constant 0 : index
    %450 = vector.load %arg1[%c2_125, %449, %c0_126] : memref<4x64x128xf32, #tpu.memory_space<vmem>>, vector<1x8x128xf32>
    %451 = vector.shape_cast %450 : vector<1x8x128xf32> to vector<8x128xf32>
    %c3_127 = arith.constant 3 : index
    %452 = arith.index_cast %442 : i32 to index
    %c0_128 = arith.constant 0 : index
    %453 = vector.load %arg1[%c3_127, %452, %c0_128] : memref<4x64x128xf32, #tpu.memory_space<vmem>>, vector<1x8x128xf32>
    %454 = vector.shape_cast %453 : vector<1x8x128xf32> to vector<8x128xf32>
    %c0_129 = arith.constant 0 : index
    %455 = arith.index_cast %442 : i32 to index
    %c0_130 = arith.constant 0 : index
    %456 = vector.load %arg2[%c0_129, %455, %c0_130] : memref<4x64x128xf32, #tpu.memory_space<vmem>>, vector<1x8x128xf32>
    %457 = vector.shape_cast %456 : vector<1x8x128xf32> to vector<8x128xf32>
    %c1_131 = arith.constant 1 : index
    %458 = arith.index_cast %442 : i32 to index
    %c0_132 = arith.constant 0 : index
    %459 = vector.load %arg2[%c1_131, %458, %c0_132] : memref<4x64x128xf32, #tpu.memory_space<vmem>>, vector<1x8x128xf32>
    %460 = vector.shape_cast %459 : vector<1x8x128xf32> to vector<8x128xf32>
    %c2_133 = arith.constant 2 : index
    %461 = arith.index_cast %442 : i32 to index
    %c0_134 = arith.constant 0 : index
    %462 = vector.load %arg2[%c2_133, %461, %c0_134] : memref<4x64x128xf32, #tpu.memory_space<vmem>>, vector<1x8x128xf32>
    %463 = vector.shape_cast %462 : vector<1x8x128xf32> to vector<8x128xf32>
    %c3_135 = arith.constant 3 : index
    %464 = arith.index_cast %442 : i32 to index
    %c0_136 = arith.constant 0 : index
    %465 = vector.load %arg2[%c3_135, %464, %c0_136] : memref<4x64x128xf32, #tpu.memory_space<vmem>>, vector<1x8x128xf32>
    %466 = vector.shape_cast %465 : vector<1x8x128xf32> to vector<8x128xf32>
    %467 = arith.minimumf %451, %463 : vector<8x128xf32>
    %468 = arith.maximumf %445, %457 : vector<8x128xf32>
    %469 = arith.subf %467, %468 : vector<8x128xf32>
    %cst_137 = arith.constant 0.000000e+00 : f32
    %470 = vector.broadcast %cst_137 : f32 to vector<8x128xf32>
    %471 = arith.maximumf %469, %470 : vector<8x128xf32>
    %472 = arith.minimumf %454, %466 : vector<8x128xf32>
    %473 = arith.maximumf %448, %460 : vector<8x128xf32>
    %474 = arith.subf %472, %473 : vector<8x128xf32>
    %cst_138 = arith.constant 0.000000e+00 : f32
    %475 = vector.broadcast %cst_138 : f32 to vector<8x128xf32>
    %476 = arith.maximumf %474, %475 : vector<8x128xf32>
    %477 = arith.mulf %471, %476 : vector<8x128xf32>
    %478 = arith.subf %451, %445 : vector<8x128xf32>
    %479 = arith.subf %454, %448 : vector<8x128xf32>
    %480 = arith.mulf %478, %479 : vector<8x128xf32>
    %481 = arith.subf %463, %457 : vector<8x128xf32>
    %482 = arith.subf %466, %460 : vector<8x128xf32>
    %483 = arith.mulf %481, %482 : vector<8x128xf32>
    %484 = arith.addf %480, %483 : vector<8x128xf32>
    %485 = arith.subf %484, %477 : vector<8x128xf32>
    %cst_139 = arith.constant 9.99999997E-7 : f32
    %486 = vector.broadcast %cst_139 : f32 to vector<8x128xf32>
    %487 = arith.addf %485, %486 : vector<8x128xf32>
    %488 = arith.maximumf %451, %463 : vector<8x128xf32>
    %489 = arith.minimumf %445, %457 : vector<8x128xf32>
    %490 = arith.subf %488, %489 : vector<8x128xf32>
    %491 = arith.maximumf %454, %466 : vector<8x128xf32>
    %492 = arith.minimumf %448, %460 : vector<8x128xf32>
    %493 = arith.subf %491, %492 : vector<8x128xf32>
    %494 = arith.mulf %490, %490 : vector<8x128xf32>
    %495 = arith.mulf %493, %493 : vector<8x128xf32>
    %496 = arith.addf %494, %495 : vector<8x128xf32>
    %cst_140 = arith.constant 9.99999997E-7 : f32
    %497 = vector.broadcast %cst_140 : f32 to vector<8x128xf32>
    %498 = arith.addf %496, %497 : vector<8x128xf32>
    %499 = arith.addf %445, %451 : vector<8x128xf32>
    %500 = arith.addf %457, %463 : vector<8x128xf32>
    %501 = arith.subf %499, %500 : vector<8x128xf32>
    %502 = arith.addf %448, %454 : vector<8x128xf32>
    %503 = arith.addf %460, %466 : vector<8x128xf32>
    %504 = arith.subf %502, %503 : vector<8x128xf32>
    %505 = arith.mulf %501, %501 : vector<8x128xf32>
    %506 = arith.mulf %504, %504 : vector<8x128xf32>
    %507 = arith.addf %505, %506 : vector<8x128xf32>
    %cst_141 = arith.constant 2.500000e-01 : f32
    %508 = vector.broadcast %cst_141 : f32 to vector<8x128xf32>
    %509 = arith.mulf %508, %507 : vector<8x128xf32>
    %510 = arith.mulf %509, %487 : vector<8x128xf32>
    %511 = arith.mulf %477, %498 : vector<8x128xf32>
    %512 = arith.subf %510, %511 : vector<8x128xf32>
    %513 = arith.mulf %487, %498 : vector<8x128xf32>
    %514 = arith.divf %512, %513 : vector<8x128xf32>
    %cst_142 = arith.constant 1.000000e+00 : f32
    %515 = vector.broadcast %cst_142 : f32 to vector<8x128xf32>
    %516 = arith.addf %515, %514 : vector<8x128xf32>
    %517 = arith.addi %0, %442 : i32
    %518 = vector.broadcast %517 : i32 to vector<8x128xi32>
    %519 = arith.addi %518, %1 : vector<8x128xi32>
    %c128_i32_143 = arith.constant 128 : i32
    %520 = vector.broadcast %c128_i32_143 : i32 to vector<8x128xi32>
    %521 = arith.muli %519, %520 : vector<8x128xi32>
    %522 = arith.addi %521, %2 : vector<8x128xi32>
    %c200_i32_144 = arith.constant 200 : i32
    %523 = vector.broadcast %c200_i32_144 : i32 to vector<8x128xi32>
    %524 = arith.cmpi slt, %522, %523 : vector<8x128xi32>
    %cst_145 = arith.constant 0.000000e+00 : f32
    %525 = vector.broadcast %cst_145 : f32 to vector<8x128xf32>
    %526 = arith.select %524, %516, %525 : vector<8x128xi1>, vector<8x128xf32>
    %527 = arith.addf %440, %526 : vector<8x128xf32>
    %c48_i32 = arith.constant 48 : i32
    %528 = arith.addi %5, %c48_i32 : i32
    %529 = tpu.assume_multiple %528, 8 : i32
    %c0_146 = arith.constant 0 : index
    %530 = arith.index_cast %529 : i32 to index
    %c0_147 = arith.constant 0 : index
    %531 = vector.load %arg1[%c0_146, %530, %c0_147] : memref<4x64x128xf32, #tpu.memory_space<vmem>>, vector<1x8x128xf32>
    %532 = vector.shape_cast %531 : vector<1x8x128xf32> to vector<8x128xf32>
    %c1_148 = arith.constant 1 : index
    %533 = arith.index_cast %529 : i32 to index
    %c0_149 = arith.constant 0 : index
    %534 = vector.load %arg1[%c1_148, %533, %c0_149] : memref<4x64x128xf32, #tpu.memory_space<vmem>>, vector<1x8x128xf32>
    %535 = vector.shape_cast %534 : vector<1x8x128xf32> to vector<8x128xf32>
    %c2_150 = arith.constant 2 : index
    %536 = arith.index_cast %529 : i32 to index
    %c0_151 = arith.constant 0 : index
    %537 = vector.load %arg1[%c2_150, %536, %c0_151] : memref<4x64x128xf32, #tpu.memory_space<vmem>>, vector<1x8x128xf32>
    %538 = vector.shape_cast %537 : vector<1x8x128xf32> to vector<8x128xf32>
    %c3_152 = arith.constant 3 : index
    %539 = arith.index_cast %529 : i32 to index
    %c0_153 = arith.constant 0 : index
    %540 = vector.load %arg1[%c3_152, %539, %c0_153] : memref<4x64x128xf32, #tpu.memory_space<vmem>>, vector<1x8x128xf32>
    %541 = vector.shape_cast %540 : vector<1x8x128xf32> to vector<8x128xf32>
    %c0_154 = arith.constant 0 : index
    %542 = arith.index_cast %529 : i32 to index
    %c0_155 = arith.constant 0 : index
    %543 = vector.load %arg2[%c0_154, %542, %c0_155] : memref<4x64x128xf32, #tpu.memory_space<vmem>>, vector<1x8x128xf32>
    %544 = vector.shape_cast %543 : vector<1x8x128xf32> to vector<8x128xf32>
    %c1_156 = arith.constant 1 : index
    %545 = arith.index_cast %529 : i32 to index
    %c0_157 = arith.constant 0 : index
    %546 = vector.load %arg2[%c1_156, %545, %c0_157] : memref<4x64x128xf32, #tpu.memory_space<vmem>>, vector<1x8x128xf32>
    %547 = vector.shape_cast %546 : vector<1x8x128xf32> to vector<8x128xf32>
    %c2_158 = arith.constant 2 : index
    %548 = arith.index_cast %529 : i32 to index
    %c0_159 = arith.constant 0 : index
    %549 = vector.load %arg2[%c2_158, %548, %c0_159] : memref<4x64x128xf32, #tpu.memory_space<vmem>>, vector<1x8x128xf32>
    %550 = vector.shape_cast %549 : vector<1x8x128xf32> to vector<8x128xf32>
    %c3_160 = arith.constant 3 : index
    %551 = arith.index_cast %529 : i32 to index
    %c0_161 = arith.constant 0 : index
    %552 = vector.load %arg2[%c3_160, %551, %c0_161] : memref<4x64x128xf32, #tpu.memory_space<vmem>>, vector<1x8x128xf32>
    %553 = vector.shape_cast %552 : vector<1x8x128xf32> to vector<8x128xf32>
    %554 = arith.minimumf %538, %550 : vector<8x128xf32>
    %555 = arith.maximumf %532, %544 : vector<8x128xf32>
    %556 = arith.subf %554, %555 : vector<8x128xf32>
    %cst_162 = arith.constant 0.000000e+00 : f32
    %557 = vector.broadcast %cst_162 : f32 to vector<8x128xf32>
    %558 = arith.maximumf %556, %557 : vector<8x128xf32>
    %559 = arith.minimumf %541, %553 : vector<8x128xf32>
    %560 = arith.maximumf %535, %547 : vector<8x128xf32>
    %561 = arith.subf %559, %560 : vector<8x128xf32>
    %cst_163 = arith.constant 0.000000e+00 : f32
    %562 = vector.broadcast %cst_163 : f32 to vector<8x128xf32>
    %563 = arith.maximumf %561, %562 : vector<8x128xf32>
    %564 = arith.mulf %558, %563 : vector<8x128xf32>
    %565 = arith.subf %538, %532 : vector<8x128xf32>
    %566 = arith.subf %541, %535 : vector<8x128xf32>
    %567 = arith.mulf %565, %566 : vector<8x128xf32>
    %568 = arith.subf %550, %544 : vector<8x128xf32>
    %569 = arith.subf %553, %547 : vector<8x128xf32>
    %570 = arith.mulf %568, %569 : vector<8x128xf32>
    %571 = arith.addf %567, %570 : vector<8x128xf32>
    %572 = arith.subf %571, %564 : vector<8x128xf32>
    %cst_164 = arith.constant 9.99999997E-7 : f32
    %573 = vector.broadcast %cst_164 : f32 to vector<8x128xf32>
    %574 = arith.addf %572, %573 : vector<8x128xf32>
    %575 = arith.maximumf %538, %550 : vector<8x128xf32>
    %576 = arith.minimumf %532, %544 : vector<8x128xf32>
    %577 = arith.subf %575, %576 : vector<8x128xf32>
    %578 = arith.maximumf %541, %553 : vector<8x128xf32>
    %579 = arith.minimumf %535, %547 : vector<8x128xf32>
    %580 = arith.subf %578, %579 : vector<8x128xf32>
    %581 = arith.mulf %577, %577 : vector<8x128xf32>
    %582 = arith.mulf %580, %580 : vector<8x128xf32>
    %583 = arith.addf %581, %582 : vector<8x128xf32>
    %cst_165 = arith.constant 9.99999997E-7 : f32
    %584 = vector.broadcast %cst_165 : f32 to vector<8x128xf32>
    %585 = arith.addf %583, %584 : vector<8x128xf32>
    %586 = arith.addf %532, %538 : vector<8x128xf32>
    %587 = arith.addf %544, %550 : vector<8x128xf32>
    %588 = arith.subf %586, %587 : vector<8x128xf32>
    %589 = arith.addf %535, %541 : vector<8x128xf32>
    %590 = arith.addf %547, %553 : vector<8x128xf32>
    %591 = arith.subf %589, %590 : vector<8x128xf32>
    %592 = arith.mulf %588, %588 : vector<8x128xf32>
    %593 = arith.mulf %591, %591 : vector<8x128xf32>
    %594 = arith.addf %592, %593 : vector<8x128xf32>
    %cst_166 = arith.constant 2.500000e-01 : f32
    %595 = vector.broadcast %cst_166 : f32 to vector<8x128xf32>
    %596 = arith.mulf %595, %594 : vector<8x128xf32>
    %597 = arith.mulf %596, %574 : vector<8x128xf32>
    %598 = arith.mulf %564, %585 : vector<8x128xf32>
    %599 = arith.subf %597, %598 : vector<8x128xf32>
    %600 = arith.mulf %574, %585 : vector<8x128xf32>
    %601 = arith.divf %599, %600 : vector<8x128xf32>
    %cst_167 = arith.constant 1.000000e+00 : f32
    %602 = vector.broadcast %cst_167 : f32 to vector<8x128xf32>
    %603 = arith.addf %602, %601 : vector<8x128xf32>
    %604 = arith.addi %0, %529 : i32
    %605 = vector.broadcast %604 : i32 to vector<8x128xi32>
    %606 = arith.addi %605, %1 : vector<8x128xi32>
    %c128_i32_168 = arith.constant 128 : i32
    %607 = vector.broadcast %c128_i32_168 : i32 to vector<8x128xi32>
    %608 = arith.muli %606, %607 : vector<8x128xi32>
    %609 = arith.addi %608, %2 : vector<8x128xi32>
    %c200_i32_169 = arith.constant 200 : i32
    %610 = vector.broadcast %c200_i32_169 : i32 to vector<8x128xi32>
    %611 = arith.cmpi slt, %609, %610 : vector<8x128xi32>
    %cst_170 = arith.constant 0.000000e+00 : f32
    %612 = vector.broadcast %cst_170 : f32 to vector<8x128xf32>
    %613 = arith.select %611, %603, %612 : vector<8x128xi1>, vector<8x128xf32>
    %614 = arith.addf %527, %613 : vector<8x128xf32>
    %c56_i32 = arith.constant 56 : i32
    %615 = arith.addi %5, %c56_i32 : i32
    %616 = tpu.assume_multiple %615, 8 : i32
    %c0_171 = arith.constant 0 : index
    %617 = arith.index_cast %616 : i32 to index
    %c0_172 = arith.constant 0 : index
    %618 = vector.load %arg1[%c0_171, %617, %c0_172] : memref<4x64x128xf32, #tpu.memory_space<vmem>>, vector<1x8x128xf32>
    %619 = vector.shape_cast %618 : vector<1x8x128xf32> to vector<8x128xf32>
    %c1_173 = arith.constant 1 : index
    %620 = arith.index_cast %616 : i32 to index
    %c0_174 = arith.constant 0 : index
    %621 = vector.load %arg1[%c1_173, %620, %c0_174] : memref<4x64x128xf32, #tpu.memory_space<vmem>>, vector<1x8x128xf32>
    %622 = vector.shape_cast %621 : vector<1x8x128xf32> to vector<8x128xf32>
    %c2_175 = arith.constant 2 : index
    %623 = arith.index_cast %616 : i32 to index
    %c0_176 = arith.constant 0 : index
    %624 = vector.load %arg1[%c2_175, %623, %c0_176] : memref<4x64x128xf32, #tpu.memory_space<vmem>>, vector<1x8x128xf32>
    %625 = vector.shape_cast %624 : vector<1x8x128xf32> to vector<8x128xf32>
    %c3_177 = arith.constant 3 : index
    %626 = arith.index_cast %616 : i32 to index
    %c0_178 = arith.constant 0 : index
    %627 = vector.load %arg1[%c3_177, %626, %c0_178] : memref<4x64x128xf32, #tpu.memory_space<vmem>>, vector<1x8x128xf32>
    %628 = vector.shape_cast %627 : vector<1x8x128xf32> to vector<8x128xf32>
    %c0_179 = arith.constant 0 : index
    %629 = arith.index_cast %616 : i32 to index
    %c0_180 = arith.constant 0 : index
    %630 = vector.load %arg2[%c0_179, %629, %c0_180] : memref<4x64x128xf32, #tpu.memory_space<vmem>>, vector<1x8x128xf32>
    %631 = vector.shape_cast %630 : vector<1x8x128xf32> to vector<8x128xf32>
    %c1_181 = arith.constant 1 : index
    %632 = arith.index_cast %616 : i32 to index
    %c0_182 = arith.constant 0 : index
    %633 = vector.load %arg2[%c1_181, %632, %c0_182] : memref<4x64x128xf32, #tpu.memory_space<vmem>>, vector<1x8x128xf32>
    %634 = vector.shape_cast %633 : vector<1x8x128xf32> to vector<8x128xf32>
    %c2_183 = arith.constant 2 : index
    %635 = arith.index_cast %616 : i32 to index
    %c0_184 = arith.constant 0 : index
    %636 = vector.load %arg2[%c2_183, %635, %c0_184] : memref<4x64x128xf32, #tpu.memory_space<vmem>>, vector<1x8x128xf32>
    %637 = vector.shape_cast %636 : vector<1x8x128xf32> to vector<8x128xf32>
    %c3_185 = arith.constant 3 : index
    %638 = arith.index_cast %616 : i32 to index
    %c0_186 = arith.constant 0 : index
    %639 = vector.load %arg2[%c3_185, %638, %c0_186] : memref<4x64x128xf32, #tpu.memory_space<vmem>>, vector<1x8x128xf32>
    %640 = vector.shape_cast %639 : vector<1x8x128xf32> to vector<8x128xf32>
    %641 = arith.minimumf %625, %637 : vector<8x128xf32>
    %642 = arith.maximumf %619, %631 : vector<8x128xf32>
    %643 = arith.subf %641, %642 : vector<8x128xf32>
    %cst_187 = arith.constant 0.000000e+00 : f32
    %644 = vector.broadcast %cst_187 : f32 to vector<8x128xf32>
    %645 = arith.maximumf %643, %644 : vector<8x128xf32>
    %646 = arith.minimumf %628, %640 : vector<8x128xf32>
    %647 = arith.maximumf %622, %634 : vector<8x128xf32>
    %648 = arith.subf %646, %647 : vector<8x128xf32>
    %cst_188 = arith.constant 0.000000e+00 : f32
    %649 = vector.broadcast %cst_188 : f32 to vector<8x128xf32>
    %650 = arith.maximumf %648, %649 : vector<8x128xf32>
    %651 = arith.mulf %645, %650 : vector<8x128xf32>
    %652 = arith.subf %625, %619 : vector<8x128xf32>
    %653 = arith.subf %628, %622 : vector<8x128xf32>
    %654 = arith.mulf %652, %653 : vector<8x128xf32>
    %655 = arith.subf %637, %631 : vector<8x128xf32>
    %656 = arith.subf %640, %634 : vector<8x128xf32>
    %657 = arith.mulf %655, %656 : vector<8x128xf32>
    %658 = arith.addf %654, %657 : vector<8x128xf32>
    %659 = arith.subf %658, %651 : vector<8x128xf32>
    %cst_189 = arith.constant 9.99999997E-7 : f32
    %660 = vector.broadcast %cst_189 : f32 to vector<8x128xf32>
    %661 = arith.addf %659, %660 : vector<8x128xf32>
    %662 = arith.maximumf %625, %637 : vector<8x128xf32>
    %663 = arith.minimumf %619, %631 : vector<8x128xf32>
    %664 = arith.subf %662, %663 : vector<8x128xf32>
    %665 = arith.maximumf %628, %640 : vector<8x128xf32>
    %666 = arith.minimumf %622, %634 : vector<8x128xf32>
    %667 = arith.subf %665, %666 : vector<8x128xf32>
    %668 = arith.mulf %664, %664 : vector<8x128xf32>
    %669 = arith.mulf %667, %667 : vector<8x128xf32>
    %670 = arith.addf %668, %669 : vector<8x128xf32>
    %cst_190 = arith.constant 9.99999997E-7 : f32
    %671 = vector.broadcast %cst_190 : f32 to vector<8x128xf32>
    %672 = arith.addf %670, %671 : vector<8x128xf32>
    %673 = arith.addf %619, %625 : vector<8x128xf32>
    %674 = arith.addf %631, %637 : vector<8x128xf32>
    %675 = arith.subf %673, %674 : vector<8x128xf32>
    %676 = arith.addf %622, %628 : vector<8x128xf32>
    %677 = arith.addf %634, %640 : vector<8x128xf32>
    %678 = arith.subf %676, %677 : vector<8x128xf32>
    %679 = arith.mulf %675, %675 : vector<8x128xf32>
    %680 = arith.mulf %678, %678 : vector<8x128xf32>
    %681 = arith.addf %679, %680 : vector<8x128xf32>
    %cst_191 = arith.constant 2.500000e-01 : f32
    %682 = vector.broadcast %cst_191 : f32 to vector<8x128xf32>
    %683 = arith.mulf %682, %681 : vector<8x128xf32>
    %684 = arith.mulf %683, %661 : vector<8x128xf32>
    %685 = arith.mulf %651, %672 : vector<8x128xf32>
    %686 = arith.subf %684, %685 : vector<8x128xf32>
    %687 = arith.mulf %661, %672 : vector<8x128xf32>
    %688 = arith.divf %686, %687 : vector<8x128xf32>
    %cst_192 = arith.constant 1.000000e+00 : f32
    %689 = vector.broadcast %cst_192 : f32 to vector<8x128xf32>
    %690 = arith.addf %689, %688 : vector<8x128xf32>
    %691 = arith.addi %0, %616 : i32
    %692 = vector.broadcast %691 : i32 to vector<8x128xi32>
    %693 = arith.addi %692, %1 : vector<8x128xi32>
    %c128_i32_193 = arith.constant 128 : i32
    %694 = vector.broadcast %c128_i32_193 : i32 to vector<8x128xi32>
    %695 = arith.muli %693, %694 : vector<8x128xi32>
    %696 = arith.addi %695, %2 : vector<8x128xi32>
    %c200_i32_194 = arith.constant 200 : i32
    %697 = vector.broadcast %c200_i32_194 : i32 to vector<8x128xi32>
    %698 = arith.cmpi slt, %696, %697 : vector<8x128xi32>
    %cst_195 = arith.constant 0.000000e+00 : f32
    %699 = vector.broadcast %cst_195 : f32 to vector<8x128xf32>
    %700 = arith.select %698, %690, %699 : vector<8x128xi1>, vector<8x128xf32>
    %701 = arith.addf %614, %700 : vector<8x128xf32>
    %c1_i32 = arith.constant 1 : i32
    %c0_196 = arith.constant 0 : index
    %c0_197 = arith.constant 0 : index
    %c0_198 = arith.constant 0 : index
    %702 = vector.load %arg3[%c0_196, %c0_197, %c0_198] : memref<1x8x128xf32, #tpu.memory_space<vmem>>, vector<1x8x128xf32>
    %703 = vector.shape_cast %702 : vector<1x8x128xf32> to vector<8x128xf32>
    %704 = vector.shape_cast %701 : vector<8x128xf32> to vector<1x8x128xf32>
    tpu.vector_store %arg3[%c0_196, %c0_197, %c0_198], %704 {strides = array<i32>} : memref<1x8x128xf32, #tpu.memory_space<vmem>>, vector<1x8x128xf32>,
    return
  }
  func.func @transform_0(%arg0: i32) -> (i32, i32, i32) {
    %c0_i32 = arith.constant 0 : i32
    %c0_i32_0 = arith.constant 0 : i32
    %c0_i32_1 = arith.constant 0 : i32
    return %c0_i32, %arg0, %c0_i32_0 : i32, i32, i32
  }
  func.func @transform_1(%arg0: i32) -> (i32, i32, i32) {
    %c0_i32 = arith.constant 0 : i32
    %c0_i32_0 = arith.constant 0 : i32
    %c0_i32_1 = arith.constant 0 : i32
    return %c0_i32, %arg0, %c0_i32_0 : i32, i32, i32
  }
  func.func @transform_2(%arg0: i32) -> (i32, i32, i32) {
    %c0_i32 = arith.constant 0 : i32
    %c0_i32_0 = arith.constant 0 : i32
    %c0_i32_1 = arith.constant 0 : i32
    return %arg0, %c0_i32, %c0_i32_0 : i32, i32, i32
  }
}

</mosaic_0001>

<bundles_post_ra>
// kernel: diou_loss.1
= control target key start
LH: loop header
LB: loop body
LE: loop exit
PB: predicated region body
PF: predicated region fallthrough
CT: control target
= control target key end

     0   :  { %s1474_s9 = smov 0   ;;  %s1476_s10 = smov 0   ;;  %s2451_s0 = inlined_call_operand.vmem [shape: f32[4,128,128], index: 0, kind: input, shape index: {}]   ;;  %s2452_s1 = inlined_call_operand.vmem [shape: f32[4,128,128], index: 1, kind: input, shape index: {}]   ;;  %s2453_s2 = inlined_call_operand.vmem [shape: f32[2,8,128], index: 2, kind: output, shape index: {}]  }
   0x1   :  { %s1478_s11 = smov 0  }
   0x2 LB: > { %s1490_s12 = sadd.s32 4294967295, %s1457_s11   ;;  %s1493_s13 = sadd.s32 1, %s1457_s11   ;;  %s1457_s11 = sphi %s1478_s11, %s2481_s11   ;;  %s1453_s10 = sphi %s1476_s10, %s2480_s10   ;;  %s1449_s9 = sphi %s1474_s9, %s2479_s9  }
   0x3   : > { %s16_s14 = ssub.s32 %s1457_s11, %s1493_s13  ;;  %s19_s15 = sadd.s32 1, %s1453_s10 }
   0x4   : > { %p17_p0 = scmp.eq.s32.totalorder %s16_s14, 0  ;;  %p26_p1 = scmp.ne.s32.totalorder %s1453_s10, %s1449_s9 }
   0x5   : > { %p27_p2 = scmp.eq.s32.totalorder %s1457_s11, 0  ;;  %p1317_p4 = scmp.ge.s32.totalorder %s1457_s11, 2 }
   0x6   : > { %s1502_s16 = scalar_select %p17_p0, %s1453_s10, %s19_s15  }
   0x7   : > { %p1504_p3 = por %p27_p2, %p26_p1  ;;  %104 = sbr.rel (%p1317_p4) target bundleno = 84 (0x54), region = 16 }
   0xc   : > { %107 = sbr.rel (!%p1504_p3) target bundleno = 48 (0x30), region = 20  ;;  %s109_s18 = sand.u32 (%p1504_p3), 1, %s1453_s10  }
   0xd   : > { %s1393_s19 = sshll.u32 (%p1504_p3), %s1457_s11, 6  ;;  %s1318_s20 = sshll.u32 (%p1504_p3), %s109_s18, 8 }
   0xe   : > { %s1516_s23 = scalar_lea.vmem (%p1504_p3), %s2451_s0, %s1393_s19  ;;  %s1521_s24 = scalar_lea.vmem (%p1504_p3), [#allocation2], %s1318_s20 }
   0xf   : > { %v205_v0 = vld [vmem:[%s1516_s23] sm:$0xff] (%p1504_p3)  ;;  %v207_v1 = vld [vmem:[%s1516_s23 + $0x8] sm:$0xff] (%p1504_p3)  ;;  %v209_v2 = vld [vmem:[%s1516_s23 + $0x10] sm:$0xff] (%p1504_p3) }
  0x10   : > { %206 = vst [vmem:[%s1521_s24] sm:$0xff] (%p1504_p3), %v205_v0  ;;  %v211_v3 = vld [vmem:[%s1516_s23 + $0x18] sm:$0xff] (%p1504_p3)  ;;  %v213_v4 = vld [vmem:[%s1516_s23 + $0x20] sm:$0xff] (%p1504_p3)  ;;  %v215_v5 = vld [vmem:[%s1516_s23 + $0x28] sm:$0xff] (%p1504_p3) }
  0x11   : > { %208 = vst [vmem:[%s1521_s24 + $0x8] sm:$0xff] %v207_v1  ;;  %v217_v6 = vld [vmem:[%s1516_s23 + $0x30] sm:$0xff]  ;;  %v219_v7 = vld [vmem:[%s1516_s23 + $0x38] sm:$0xff]  ;;  %v221_v8 = vld [vmem:[%s1516_s23 + $0x80] sm:$0xff] }
  0x12   : > { %210 = vst [vmem:[%s1521_s24 + $0x10] sm:$0xff] %v209_v2  ;;  %v223_v9 = vld [vmem:[%s1516_s23 + $0x88] sm:$0xff]  ;;  %v225_v10 = vld [vmem:[%s1516_s23 + $0x90] sm:$0xff]  ;;  %v227_v11 = vld [vmem:[%s1516_s23 + $0x98] sm:$0xff] }
  0x13   : > { %212 = vst [vmem:[%s1521_s24 + $0x18] sm:$0xff] %v211_v3  ;;  %v229_v12 = vld [vmem:[%s1516_s23 + $0xa0] sm:$0xff]  ;;  %v231_v13 = vld [vmem:[%s1516_s23 + $0xa8] sm:$0xff]  ;;  %v233_v14 = vld [vmem:[%s1516_s23 + $0xb0] sm:$0xff] }
  0x14   : > { %214 = vst [vmem:[%s1521_s24 + $0x20] sm:$0xff] %v213_v4  ;;  %v235_v15 = vld [vmem:[%s1516_s23 + $0xb8] sm:$0xff]  ;;  %v237_v16 = vld [vmem:[%s1516_s23 + $0x100] sm:$0xff]  ;;  %v239_v17 = vld [vmem:[%s1516_s23 + $0x108] sm:$0xff] }
  0x15   : > { %216 = vst [vmem:[%s1521_s24 + $0x28] sm:$0xff] %v215_v5  ;;  %v241_v18 = vld [vmem:[%s1516_s23 + $0x110] sm:$0xff]  ;;  %v243_v19 = vld [vmem:[%s1516_s23 + $0x118] sm:$0xff]  ;;  %v245_v20 = vld [vmem:[%s1516_s23 + $0x120] sm:$0xff] }
  0x16   : > { %218 = vst [vmem:[%s1521_s24 + $0x30] sm:$0xff] %v217_v6  ;;  %v247_v21 = vld [vmem:[%s1516_s23 + $0x128] sm:$0xff]  ;;  %v249_v22 = vld [vmem:[%s1516_s23 + $0x130] sm:$0xff]  ;;  %v251_v23 = vld [vmem:[%s1516_s23 + $0x138] sm:$0xff] }
  0x17   : > { %220 = vst [vmem:[%s1521_s24 + $0x38] sm:$0xff] %v219_v7  ;;  %v253_v24 = vld [vmem:[%s1516_s23 + $0x180] sm:$0xff]  ;;  %v255_v25 = vld [vmem:[%s1516_s23 + $0x188] sm:$0xff]  ;;  %v257_v26 = vld [vmem:[%s1516_s23 + $0x190] sm:$0xff] }
  0x18   : > { %222 = vst [vmem:[%s1521_s24 + $0x40] sm:$0xff] %v221_v8  ;;  %v259_v27 = vld [vmem:[%s1516_s23 + $0x198] sm:$0xff]  ;;  %v261_v28 = vld [vmem:[%s1516_s23 + $0x1a0] sm:$0xff]  ;;  %v263_v29 = vld [vmem:[%s1516_s23 + $0x1a8] sm:$0xff] }
  0x19   : > { %224 = vst [vmem:[%s1521_s24 + $0x48] sm:$0xff] %v223_v9  ;;  %v265_v30 = vld [vmem:[%s1516_s23 + $0x1b0] sm:$0xff]  ;;  %v267_v31 = vld [vmem:[%s1516_s23 + $0x1b8] sm:$0xff] }
  0x1a   : > { %226 = vst [vmem:[%s1521_s24 + $0x50] sm:$0xff] %v225_v10 }
  0x1b   : > { %228 = vst [vmem:[%s1521_s24 + $0x58] sm:$0xff] %v227_v11 }
  0x1c   : > { %230 = vst [vmem:[%s1521_s24 + $0x60] sm:$0xff] %v229_v12 }
  0x1d   : > { %232 = vst [vmem:[%s1521_s24 + $0x68] sm:$0xff] %v231_v13 }
  0x1e   : > { %234 = vst [vmem:[%s1521_s24 + $0x70] sm:$0xff] %v233_v14 }
  0x1f   : > { %236 = vst [vmem:[%s1521_s24 + $0x78] sm:$0xff] %v235_v15 }
  0x20   : > { %238 = vst [vmem:[%s1521_s24 + $0x80] sm:$0xff] %v237_v16 }
  0x21   : > { %240 = vst [vmem:[%s1521_s24 + $0x88] sm:$0xff] %v239_v17 }
  0x22   : > { %242 = vst [vmem:[%s1521_s24 + $0x90] sm:$0xff] %v241_v18 }
  0x23   : > { %244 = vst [vmem:[%s1521_s24 + $0x98] sm:$0xff] %v243_v19 }
  0x24   : > { %246 = vst [vmem:[%s1521_s24 + $0xa0] sm:$0xff] %v245_v20 }
  0x25   : > { %248 = vst [vmem:[%s1521_s24 + $0xa8] sm:$0xff] %v247_v21 }
  0x26   : > { %250 = vst [vmem:[%s1521_s24 + $0xb0] sm:$0xff] %v249_v22 }
  0x27   : > { %252 = vst [vmem:[%s1521_s24 + $0xb8] sm:$0xff] %v251_v23 }
  0x28   : > { %254 = vst [vmem:[%s1521_s24 + $0xc0] sm:$0xff] %v253_v24 }
  0x29   : > { %256 = vst [vmem:[%s1521_s24 + $0xc8] sm:$0xff] %v255_v25 }
  0x2a   : > { %258 = vst [vmem:[%s1521_s24 + $0xd0] sm:$0xff] %v257_v26 }
  0x2b   : > { %260 = vst [vmem:[%s1521_s24 + $0xd8] sm:$0xff] %v259_v27 }
  0x2c   : > { %262 = vst [vmem:[%s1521_s24 + $0xe0] sm:$0xff] %v261_v28 }
  0x2d   : > { %264 = vst [vmem:[%s1521_s24 + $0xe8] sm:$0xff] %v263_v29 }
  0x2e   : > { %266 = vst [vmem:[%s1521_s24 + $0xf0] sm:$0xff] %v265_v30 }
  0x2f   : > { %268 = vst [vmem:[%s1521_s24 + $0xf8] sm:$0xff] %v267_v31 }
  0x30 PF: > { %274 = sbr.rel (!%p1504_p3) target bundleno = 84 (0x54), region = 58  ;;  %s276_s25 = sand.u32 (%p1504_p3), 1, %s1453_s10  }
  0x31   : > { %s1394_s26 = sshll.u32 (%p1504_p3), %s1457_s11, 6  ;;  %s1321_s27 = sshll.u32 (%p1504_p3), %s276_s25, 8 }
  0x32   : > { %s1591_s30 = scalar_lea.vmem (%p1504_p3), %s2452_s1, %s1394_s26  ;;  %s1596_s3 = scalar_lea.vmem (%p1504_p3), [#allocation3], %s1321_s27 }
  0x33   : > { %v372_v32 = vld [vmem:[%s1591_s30] sm:$0xff] (%p1504_p3)  ;;  %v374_v33 = vld [vmem:[%s1591_s30 + $0x8] sm:$0xff] (%p1504_p3)  ;;  %v376_v34 = vld [vmem:[%s1591_s30 + $0x10] sm:$0xff] (%p1504_p3) }
  0x34   : > { %373 = vst [vmem:[%s1596_s3] sm:$0xff] (%p1504_p3), %v372_v32  ;;  %v378_v35 = vld [vmem:[%s1591_s30 + $0x18] sm:$0xff] (%p1504_p3)  ;;  %v380_v36 = vld [vmem:[%s1591_s30 + $0x20] sm:$0xff] (%p1504_p3)  ;;  %v382_v37 = vld [vmem:[%s1591_s30 + $0x28] sm:$0xff] (%p1504_p3) }
  0x35   : > { %375 = vst [vmem:[%s1596_s3 + $0x8] sm:$0xff] %v374_v33  ;;  %v384_v38 = vld [vmem:[%s1591_s30 + $0x30] sm:$0xff]  ;;  %v386_v39 = vld [vmem:[%s1591_s30 + $0x38] sm:$0xff]  ;;  %v388_v40 = vld [vmem:[%s1591_s30 + $0x80] sm:$0xff] }
  0x36   : > { %377 = vst [vmem:[%s1596_s3 + $0x10] sm:$0xff] %v376_v34  ;;  %v390_v41 = vld [vmem:[%s1591_s30 + $0x88] sm:$0xff]  ;;  %v392_v42 = vld [vmem:[%s1591_s30 + $0x90] sm:$0xff]  ;;  %v394_v43 = vld [vmem:[%s1591_s30 + $0x98] sm:$0xff] }
  0x37   : > { %379 = vst [vmem:[%s1596_s3 + $0x18] sm:$0xff] %v378_v35  ;;  %v396_v44 = vld [vmem:[%s1591_s30 + $0xa0] sm:$0xff]  ;;  %v398_v45 = vld [vmem:[%s1591_s30 + $0xa8] sm:$0xff]  ;;  %v400_v46 = vld [vmem:[%s1591_s30 + $0xb0] sm:$0xff] }
  0x38   : > { %381 = vst [vmem:[%s1596_s3 + $0x20] sm:$0xff] %v380_v36  ;;  %v402_v47 = vld [vmem:[%s1591_s30 + $0xb8] sm:$0xff]  ;;  %v404_v48 = vld [vmem:[%s1591_s30 + $0x100] sm:$0xff]  ;;  %v406_v49 = vld [vmem:[%s1591_s30 + $0x108] sm:$0xff] }
  0x39   : > { %383 = vst [vmem:[%s1596_s3 + $0x28] sm:$0xff] %v382_v37  ;;  %v408_v50 = vld [vmem:[%s1591_s30 + $0x110] sm:$0xff]  ;;  %v410_v51 = vld [vmem:[%s1591_s30 + $0x118] sm:$0xff]  ;;  %v412_v52 = vld [vmem:[%s1591_s30 + $0x120] sm:$0xff] }
  0x3a   : > { %385 = vst [vmem:[%s1596_s3 + $0x30] sm:$0xff] %v384_v38  ;;  %v414_v53 = vld [vmem:[%s1591_s30 + $0x128] sm:$0xff]  ;;  %v416_v54 = vld [vmem:[%s1591_s30 + $0x130] sm:$0xff]  ;;  %v418_v55 = vld [vmem:[%s1591_s30 + $0x138] sm:$0xff] }
  0x3b   : > { %387 = vst [vmem:[%s1596_s3 + $0x38] sm:$0xff] %v386_v39  ;;  %v420_v56 = vld [vmem:[%s1591_s30 + $0x180] sm:$0xff]  ;;  %v422_v57 = vld [vmem:[%s1591_s30 + $0x188] sm:$0xff]  ;;  %v424_v58 = vld [vmem:[%s1591_s30 + $0x190] sm:$0xff] }
  0x3c   : > { %389 = vst [vmem:[%s1596_s3 + $0x40] sm:$0xff] %v388_v40  ;;  %v426_v59 = vld [vmem:[%s1591_s30 + $0x198] sm:$0xff]  ;;  %v428_v60 = vld [vmem:[%s1591_s30 + $0x1a0] sm:$0xff]  ;;  %v430_v61 = vld [vmem:[%s1591_s30 + $0x1a8] sm:$0xff] }
  0x3d   : > { %391 = vst [vmem:[%s1596_s3 + $0x48] sm:$0xff] %v390_v41  ;;  %v432_v62 = vld [vmem:[%s1591_s30 + $0x1b0] sm:$0xff]  ;;  %v434_v63 = vld [vmem:[%s1591_s30 + $0x1b8] sm:$0xff] }
  0x3e   : > { %393 = vst [vmem:[%s1596_s3 + $0x50] sm:$0xff] %v392_v42 }
  0x3f   : > { %395 = vst [vmem:[%s1596_s3 + $0x58] sm:$0xff] %v394_v43 }
  0x40   : > { %397 = vst [vmem:[%s1596_s3 + $0x60] sm:$0xff] %v396_v44 }
  0x41   : > { %399 = vst [vmem:[%s1596_s3 + $0x68] sm:$0xff] %v398_v45 }
  0x42   : > { %401 = vst [vmem:[%s1596_s3 + $0x70] sm:$0xff] %v400_v46 }
  0x43   : > { %403 = vst [vmem:[%s1596_s3 + $0x78] sm:$0xff] %v402_v47 }
  0x44   : > { %405 = vst [vmem:[%s1596_s3 + $0x80] sm:$0xff] %v404_v48 }
  0x45   : > { %407 = vst [vmem:[%s1596_s3 + $0x88] sm:$0xff] %v406_v49 }
  0x46   : > { %409 = vst [vmem:[%s1596_s3 + $0x90] sm:$0xff] %v408_v50 }
  0x47   : > { %411 = vst [vmem:[%s1596_s3 + $0x98] sm:$0xff] %v410_v51 }
  0x48   : > { %413 = vst [vmem:[%s1596_s3 + $0xa0] sm:$0xff] %v412_v52 }
  0x49   : > { %415 = vst [vmem:[%s1596_s3 + $0xa8] sm:$0xff] %v414_v53 }
  0x4a   : > { %417 = vst [vmem:[%s1596_s3 + $0xb0] sm:$0xff] %v416_v54 }
  0x4b   : > { %419 = vst [vmem:[%s1596_s3 + $0xb8] sm:$0xff] %v418_v55 }
  0x4c   : > { %421 = vst [vmem:[%s1596_s3 + $0xc0] sm:$0xff] %v420_v56 }
  0x4d   : > { %423 = vst [vmem:[%s1596_s3 + $0xc8] sm:$0xff] %v422_v57 }
  0x4e   : > { %425 = vst [vmem:[%s1596_s3 + $0xd0] sm:$0xff] %v424_v58 }
  0x4f   : > { %427 = vst [vmem:[%s1596_s3 + $0xd8] sm:$0xff] %v426_v59 }
  0x50   : > { %429 = vst [vmem:[%s1596_s3 + $0xe0] sm:$0xff] %v428_v60 }
  0x51   : > { %431 = vst [vmem:[%s1596_s3 + $0xe8] sm:$0xff] %v430_v61 }
  0x52   : > { %433 = vst [vmem:[%s1596_s3 + $0xf0] sm:$0xff] %v432_v62 }
  0x53   : > { %435 = vst [vmem:[%s1596_s3 + $0xf8] sm:$0xff] %v434_v63 }
  0x54 PF: > { %p1324_p5 = scmp.ge.s32.totalorder %s1457_s11, 1  ;;  %p440_p6 = scmp.lt.s32.totalorder %s1457_s11, 3 }
  0x56   : > { %p441_p7 = pnand %p1324_p5, %p440_p6 }
  0x57   : > { %s447_s4 = sand.u32 (!%p441_p7), 1, %s1449_s9   ;;  %s1780_s8 = sshll.u32 (!%p441_p7), %s1490_s12, 6 }
  0x58   : > { %444 = sbr.rel (%p441_p7) target bundleno = 237 (0xed), region = 96  ;;  %s1325_s5 = sshll.u32 (!%p441_p7), %s447_s4, 8 }
  0x59   : > { %s1662_s6 = scalar_lea.vmem (!%p441_p7), [#allocation2], %s1325_s5  ;;  %s1674_s7 = scalar_lea.vmem (!%p441_p7), [#allocation3], %s1325_s5 }
  0x5a   : > { %s650_s9 = sadd.s32 (!%p441_p7), 8, %s1780_s8  ;;  %s736_s11 = sadd.s32 (!%p441_p7), 16, %s1780_s8 }
  0x5b   : > { %s822_s14 = sadd.s32 (!%p441_p7), 24, %s1780_s8  ;;  %s908_s15 = sadd.s32 (!%p441_p7), 32, %s1780_s8 }
  0x5c   : > { %s994_s17 = sadd.s32 (!%p441_p7), 40, %s1780_s8  ;;  %s1080_s18 = sadd.s32 (!%p441_p7), 48, %s1780_s8 }
  0x5d   : > { %v1665_v0 = vld [vmem:[%s1662_s6] sm:$0xff]  ;;  %v1690_v24 = vld [vmem:[%s1662_s6 + $0x8] sm:$0xff]  ;;  %s1166_s19 = sadd.s32 56, %s1780_s8  ;;  %p480_p8 = scmp.lt.s32.totalorder %s1490_s12, 1 }
  0x5e   : > { %v1668_v1 = vld [vmem:[%s1662_s6 + $0x40] sm:$0xff]  ;;  %v1693_v27 = vld [vmem:[%s1662_s6 + $0x88] sm:$0xff] }
  0x5f   : > { %v1330_v2 = vld [vmem:[%s1662_s6 + $0x80] sm:$0xff]  ;;  %v1696_v28 = vld [vmem:[%s1674_s7 + $0x8] sm:$0xff]  ;;  %v601_v47 = vsub.f32 %v1693_v27, %v1690_v24  ;;  %s2483_s12 = smov (!%p480_p8, %s1490_s12), 1 }
  0x60   : > { %v1672_v3 = vld [vmem:[%s1662_s6 + $0xc0] sm:$0xff]  ;;  %v515_v6 = vsub.f32 %v1330_v2, %v1665_v0  ;;  %v1699_v29 = vld [vmem:[%s1674_s7 + $0x88] sm:$0xff]  ;;  %v593_v41 = vmax.f32 %v1690_v24, %v1696_v28  ;;  %v611_v59 = vmin.f32 %v1690_v24, %v1696_v28  ;;  %v534_v63 = vadd.f32 %v1330_v2, %v1665_v0  ;;  %s1327_s20 = sshll.u32 %s2483_s12, 3 }
  0x61   : > { %v499_v4 = vld [vmem:[%s1674_s7] sm:$0xff]  ;;  %v516_v11 = vsub.f32 %v1672_v3, %v1668_v1  ;;  %v1702_v33 = vld [vmem:[%s1662_s6 + $0xc8] sm:$0xff]  ;;  %v592_v40 = vmin.f32 %v1693_v27, %v1699_v29  ;;  %v604_v52 = vsub.f32 %v1699_v29, %v1696_v28  ;;  %v610_v58 = vmax.f32 %v1693_v27, %v1699_v29  ;;  %s483_s23 = scalar_lea.vmem %s2453_s2, %s1327_s20 }
  0x62   : > { %v1332_v5 = vld [vmem:[%s1674_s7 + $0x40] sm:$0xff]  ;;  %v507_v9 = vmax.f32 %v1665_v0, %v499_v4  ;;  %v525_v12 = vmin.f32 %v1665_v0, %v499_v4  ;;  %v1705_v34 = vld [vmem:[%s1674_s7 + $0xc8] sm:$0xff] }
  0x63   : > { %v1333_v7 = vld [vmem:[%s1674_s7 + $0x80] sm:$0xff]  ;;  %v511_v10 = vmax.f32 %v1668_v1, %v1332_v5  ;;  %v517_v17 = vmul.f32 %v516_v11, %v515_v6  ;;  %v528_v20 = vmin.f32 %v1668_v1, %v1332_v5  ;;  %v1708_v37 = vld [vmem:[%s1662_s6 + $0x48] sm:$0xff]  ;;  %v596_v43 = vmin.f32 %v1702_v33, %v1705_v34 }
  0x64   : > { %v1334_v8 = vld [vmem:[%s1674_s7 + $0xc0] sm:$0xff]  ;;  %v506_v13 = vmin.f32 %v1330_v2, %v1333_v7  ;;  %v518_v15 = vsub.f32 %v1333_v7, %v499_v4  ;;  %v524_v18 = vmax.f32 %v1330_v2, %v1333_v7  ;;  %v1711_v38 = vld [vmem:[%s1674_s7 + $0x48] sm:$0xff]  ;;  %v594_v45 = vsub.f32 %v592_v40, %v593_v41  ;;  %v1761_v2 = vld [vmem:[%s1662_s6 + $0x90] sm:$0xff] }
  0x65   : > { %v510_v14 = vmin.f32 %v1672_v3, %v1334_v8  ;;  %v519_v16 = vsub.f32 %v1334_v8, %v1332_v5  ;;  %v527_v19 = vmax.f32 %v1672_v3, %v1334_v8  ;;  %v597_v46 = vmax.f32 %v1708_v37, %v1711_v38 }
  0x66   : > { %v508_v21 = vsub.f32 %v506_v13, %v507_v9  ;;  %v526_v25 = vsub.f32 %v524_v18, %v525_v12  ;;  %v602_v49 = vsub.f32 %v1702_v33, %v1708_v37  ;;  %v595_v53 = vmax.f32 %v594_v45, 0.0 }
  0x67   : > { %v512_v22 = vsub.f32 %v510_v14, %v511_v10  ;;  %v520_v23 = vmul.f32 %v519_v16, %v518_v15  ;;  %v529_v26 = vsub.f32 %v527_v19, %v528_v20  ;;  %v598_v51 = vsub.f32 %v596_v43, %v597_v46  ;;  %v1754_v14 = vld [vmem:[%s1662_s6 + $0x10] sm:$0xff] }
  0x68   : > { %v509_v30 = vmax.f32 %v508_v21, 0.0  ;;  %v530_v35 = vmul.f32 %v526_v25, %v526_v25  ;;  %v603_v54 = vmul.f32 %v602_v49, %v601_v47  ;;  %v605_v55 = vsub.f32 %v1705_v34, %v1711_v38  ;;  %v1757_v15 = vld [vmem:[%s1662_s6 + $0x50] sm:$0xff] }
  0x69   : > { %v513_v31 = vmax.f32 %v512_v22, 0.0  ;;  %v521_v32 = vadd.f32 %v520_v23, %v517_v17  ;;  %v531_v36 = vmul.f32 %v529_v26, %v529_v26  ;;  %v599_v57 = vmax.f32 %v598_v51, 0.0  ;;  %v1774_v16 = vld [vmem:[%s1674_s7 + $0x50] sm:$0xff] }
  0x6a   : > { %v606_v60 = vmul.f32 %v605_v55, %v604_v52  ;;  %v613_v61 = vmax.f32 %v1702_v33, %v1705_v34  ;;  %v614_v62 = vmin.f32 %v1708_v37, %v1711_v38  ;;  %v535_v6 = vadd.f32 %v1333_v7, %v499_v4  ;;  %v1764_v4 = vld [vmem:[%s1674_s7 + $0x10] sm:$0xff] }
  0x6b   : > { %v1713_v39 = vmul.f32 %v513_v31, %v509_v30  ;;  %v532_v42 = vadd.f32 %v531_v36, %v530_v35  ;;  %v537_v9 = vadd.f32 %v1672_v3, %v1668_v1  ;;  %v538_v10 = vadd.f32 %v1334_v8, %v1332_v5  ;;  %v1767_v1 = vld [vmem:[%s1674_s7 + $0x90] sm:$0xff] }
  0x6c   : > { %v1751_v11 = vmul.f32 %v599_v57, %v595_v53  ;;  %v607_v12 = vadd.f32 %v606_v60, %v603_v54  ;;  %v612_v13 = vsub.f32 %v610_v58, %v611_v59  ;;  %v615_v0 = vsub.f32 %v613_v61, %v614_v62  ;;  %v1771_v8 = vld [vmem:[%s1662_s6 + $0xd0] sm:$0xff] }
  0x6d   : > { %v522_v44 = vsub.f32 %v521_v32, %v1713_v39  ;;  %v1726_v48 = vadd.f32 1e-06, %v532_v42  ;;  %v485_v3 = vlaneseq  ;;  %v1777_v17 = vld [vmem:[%s1674_s7 + $0xd0] sm:$0xff]  ;;  %v536_v19 = vsub.f32 %v534_v63, %v535_v6 }
  0x6e   : > { %v608_v5 = vsub.f32 %v607_v12, %v1751_v11  ;;  %v616_v7 = vmul.f32 %v612_v13, %v612_v13  ;;  %v617_v18 = vmul.f32 %v615_v0, %v615_v0  ;;  %v539_v20 = vsub.f32 %v537_v9, %v538_v10 }
  0x6f   : > { %v1730_v50 = vadd.f32 1e-06, %v522_v44  ;;  %v678_v21 = vmin.f32 %v1761_v2, %v1767_v1  ;;  %v679_v22 = vmax.f32 %v1754_v14, %v1764_v4  ;;  %v682_v26 = vmin.f32 %v1771_v8, %v1777_v17 }
  0x70   : > { %v1786_v23 = vadd.f32 1e-06, %v608_v5  ;;  %v618_v25 = vadd.f32 %v617_v18, %v616_v7  ;;  %v683_v30 = vmax.f32 %v1757_v15, %v1774_v16  ;;  %v1792_v31 = vshrl.u32 %v485_v3, 7 }
  0x71   : > { %v1738_v56 = vmul.f32 %v1726_v48, %v1730_v50  ;;  %v565_v35 = vstv %s1780_s8  ;;  %v540_v40 = vmul.f32 %v536_v19, %v536_v19  ;;  %v541_v41 = vmul.f32 %v539_v20, %v539_v20 }
  0x72   : > { %v1797_v36 = vadd.f32 1e-06, %v618_v25  ;;  %v680_v42 = vsub.f32 %v678_v21, %v679_v22  ;;  %v684_v43 = vsub.f32 %v682_v26, %v683_v30  ;;  %v687_v45 = vsub.f32 %v1761_v2, %v1754_v14  ;;  %v1848_v26 = vld [vmem:[%s1662_s6 + $0x58] sm:$0xff] }
  0x73   : > { %1419 = vrcp.f32 %v1738_v56  ;;  %v688_v46 = vsub.f32 %v1771_v8, %v1757_v15  ;;  %v566_v49 = vadd.s32 %v565_v35, %v1792_v31  ;;  %v620_v51 = vadd.f32 %v1693_v27, %v1690_v24  ;;  %v1860_v35 = vld [vmem:[%s1674_s7 + $0x18] sm:$0xff] }
  0x74   : > { %v1801_v44 = vmul.f32 %v1797_v36, %v1786_v23  ;;  %v621_v52 = vadd.f32 %v1699_v29, %v1696_v28  ;;  %v623_v53 = vadd.f32 %v1702_v33, %v1708_v37  ;;  %v624_v54 = vadd.f32 %v1705_v34, %v1711_v38 }
  0x75   : > { %v542_v55 = vadd.f32 %v541_v41, %v540_v40  ;;  %v681_v57 = vmax.f32 %v680_v42, 0.0  ;;  %v685_v58 = vmax.f32 %v684_v43, 0.0  ;;  %v690_v59 = vsub.f32 %v1767_v1, %v1764_v4  ;;  %v1863_v40 = vld [vmem:[%s1674_s7 + $0x98] sm:$0xff] }
  0x76   : > { %1421 = vrcp.f32 %v1801_v44  ;;  %v689_v60 = vmul.f32 %v688_v46, %v687_v45  ;;  %v691_v24 = vsub.f32 %v1777_v17, %v1774_v16  ;;  %v696_v27 = vmax.f32 %v1761_v2, %v1767_v1  ;;  %v1871_v46 = vld [vmem:[%s1674_s7 + $0x58] sm:$0xff] }
  0x77   : > { %v651_v29 = vstv %s650_s9  ;;  %v697_v33 = vmin.f32 %v1754_v14, %v1764_v4  ;;  %v699_v34 = vmax.f32 %v1771_v8, %v1777_v17  ;;  %v622_v37 = vsub.f32 %v620_v51, %v621_v52  ;;  %v1959_v52 = vld [vmem:[%s1674_s7 + $0x20] sm:$0xff] }
  0x78   : > { %v625_v38 = vsub.f32 %v623_v53, %v624_v54  ;;  %v692_v61 = vmul.f32 %v691_v24, %v690_v59  ;;  %v700_v62 = vmin.f32 %v1757_v15, %v1774_v16  ;;  %v543_v63 = vmul.f32 0.25, %v542_v55  ;;  %v1974_v59 = vld [vmem:[%s1662_s6 + $0xe0] sm:$0xff] }
  0x79   : > { %v1794_v32 = vpop.eup %1419  ;;  %v698_v6 = vsub.f32 %v696_v27, %v697_v33  ;;  %v652_v9 = vadd.s32 %v651_v29, %v1792_v31  ;;  %v1833_v10 = vmul.f32 %v685_v58, %v681_v57  ;;  %v1835_v0 = vand.u32 127, %v485_v3  ;;  %v1845_v3 = vld [vmem:[%s1662_s6 + $0x18] sm:$0xff] }
  0x7a   : > { %v549_v47 = vmul.f32 %v1794_v32, %v1738_v56  ;;  %v693_v12 = vadd.f32 %v692_v61, %v689_v60  ;;  %v701_v13 = vsub.f32 %v699_v34, %v700_v62  ;;  %v567_v7 = vmul.u32 128, %v566_v49 }
  0x7b   : > { %v702_v18 = vmul.f32 %v698_v6, %v698_v6  ;;  %v1842_v20 = vmul.f32 %v1726_v48, %v1713_v39  ;;  %v626_v21 = vmul.f32 %v622_v37, %v622_v37  ;;  %v627_v22 = vmul.f32 %v625_v38, %v625_v38  ;;  %v1857_v48 = vld [vmem:[%s1662_s6 + $0x98] sm:$0xff] }
  0x7c   : > { %v550_v28 = vsub.f32 1.0, %v549_v47  ;;  %v1838_v19 = vpop.eup %1421  ;;  %v703_v25 = vmul.f32 %v701_v13, %v701_v13  ;;  %v1851_v30 = vmul.f32 %v543_v63, %v1730_v50  ;;  %vm553_vm0 = vweird.f32 %v1738_v56  ;;  %v1868_v50 = vld [vmem:[%s1662_s6 + $0xd8] sm:$0xff] }
  0x7d   : > { %vm554_vm1 = vweird.f32 %v1794_v32  ;;  %v557_v39 = vand.u32 2147483647, %v1738_v56  ;;  %v559_v41 = vand.u32 2147483648, %v1738_v56  ;;  %v653_v42 = vmul.u32 128, %v652_v9  ;;  %v1874_v47 = vld [vmem:[%s1674_s7 + $0xd8] sm:$0xff] }
  0x7e   : > { %v551_v5 = vmul.f32 %v1794_v32, %v550_v28  ;;  %v694_v43 = vsub.f32 %v693_v12, %v1833_v10  ;;  %v704_v45 = vadd.f32 %v703_v25, %v702_v18  ;;  %v635_v51 = vmul.f32 %v1838_v19, %v1801_v44  ;;  %vm1881_vm2 = vmor %vm553_vm0, %vm554_vm1 }
  0x7f   : > { %v1886_v53 = vadd.s32 %v567_v7, %v1835_v0  ;;  %v628_v54 = vadd.f32 %v627_v22, %v626_v21  ;;  %v764_v55 = vmin.f32 %v1857_v48, %v1863_v40  ;;  %v765_v57 = vmax.f32 %v1845_v3, %v1860_v35 }
  0x80   : > { %v552_v49 = vadd.f32 %v1794_v32, %v551_v5  ;;  %v546_v58 = vsub.f32 %v1851_v30, %v1842_v20  ;;  %vm1894_vm3 = vcmp.eq.f32.partialorder %v557_v39, 8.507059e+37  ;;  %v768_v56 = vmin.f32 %v1868_v50, %v1874_v47 }
  0x81   : > { %v769_v60 = vmax.f32 %v1848_v26, %v1871_v46  ;;  %v560_v24 = vor.u32 1.1754944e-38, %v559_v41  ;;  %v1903_v27 = vadd.s32 %v653_v42, %v1835_v0  ;;  %v1905_v28 = vadd.f32 1e-06, %v694_v43  ;;  %v1950_v41 = vld [vmem:[%s1662_s6 + $0x20] sm:$0xff] }
  0x82   : > { %v1907_v29 = vadd.f32 1e-06, %v704_v45  ;;  %v556_v33 = vsel %vm1881_vm2, %v1794_v32, %v552_v49  ;;  %v636_v34 = vsub.f32 1.0, %v635_v51  ;;  %v706_v37 = vadd.f32 %v1761_v2, %v1754_v14  ;;  %v1956_v51 = vld [vmem:[%s1662_s6 + $0xa0] sm:$0xff] }
  0x83   : > { %v707_v38 = vadd.f32 %v1767_v1, %v1764_v4  ;;  %v629_v61 = vmul.f32 0.25, %v628_v54  ;;  %v709_v62 = vadd.f32 %v1771_v8, %v1757_v15  ;;  %v710_v63 = vadd.f32 %v1777_v17, %v1774_v16  ;;  %v1962_v54 = vld [vmem:[%s1674_s7 + $0xa0] sm:$0xff] }
  0x84   : > { %v766_v6 = vsub.f32 %v764_v55, %v765_v57  ;;  %vm639_vm4 = vweird.f32 %v1801_v44  ;;  %v770_v9 = vsub.f32 %v768_v56, %v769_v60  ;;  %v773_v32 = vsub.f32 %v1857_v48, %v1845_v3  ;;  %v1977_v56 = vld [vmem:[%s1674_s7 + $0xe0] sm:$0xff] }
  0x85   : > { %v774_v14 = vsub.f32 %v1868_v50, %v1848_v26  ;;  %v561_v2 = vsel %vm1894_vm3, %v560_v24, %v556_v33  ;;  %v1929_v15 = vmul.f32 %v1907_v29, %v1905_v28  ;;  %v776_v4 = vsub.f32 %v1863_v40, %v1860_v35 }
  0x86   : > { %v777_v1 = vsub.f32 %v1874_v47, %v1871_v46  ;;  %v637_v8 = vmul.f32 %v1838_v19, %v636_v34  ;;  %vm640_vm5 = vweird.f32 %v1838_v19  ;;  %v708_v16 = vsub.f32 %v706_v37, %v707_v38  ;;  %v1982_v34 = vld [vmem:[%s1662_s6 + $0x60] sm:$0xff] }
  0x87   : > { %v782_v17 = vmax.f32 %v1857_v48, %v1863_v40  ;;  %v711_v12 = vsub.f32 %v709_v62, %v710_v63  ;;  %v767_v13 = vmax.f32 %v766_v6, 0.0  ;;  %v783_v5 = vmin.f32 %v1845_v3, %v1860_v35  ;;  %vm1969_vm6 = vmor %vm639_vm4, %vm640_vm5  ;;  %v1985_v37 = vld [vmem:[%s1674_s7 + $0x60] sm:$0xff] }
  0x88   : > { %v785_v7 = vmax.f32 %v1868_v50, %v1874_v47  ;;  %v771_v18 = vmax.f32 %v770_v9, 0.0  ;;  %v775_v20 = vmul.f32 %v774_v14, %v773_v32  ;;  %v778_v21 = vmul.f32 %v777_v1, %v776_v4 }
  0x89   : > { %v786_v22 = vmin.f32 %v1848_v26, %v1871_v46  ;;  %v643_v25 = vand.u32 2147483647, %v1801_v44  ;;  %v645_v30 = vand.u32 2147483648, %v1801_v44  ;;  %1423 = vrcp.f32 %v1929_v15  ;;  %v2060_v44 = vld [vmem:[%s1662_s6 + $0xa8] sm:$0xff] }
  0x8a   : > { %v784_v39 = vsub.f32 %v782_v17, %v783_v5  ;;  %v562_v42 = vmul.f32 %v561_v2, %v546_v58  ;;  %v631_v43 = vmul.f32 %v1797_v36, %v1751_v11  ;;  %v638_v45 = vadd.f32 %v1838_v19, %v637_v8 }
  0x8b   : > { %v787_v49 = vsub.f32 %v785_v7, %v786_v22  ;;  %v630_v55 = vmul.f32 %v629_v61, %v1786_v23  ;;  %v712_v11 = vmul.f32 %v708_v16, %v708_v16  ;;  %v713_v36 = vmul.f32 %v711_v12, %v711_v12 }
  0x8c   : > { %v737_v58 = vstv %s736_s11  ;;  %v1979_v60 = vmul.f32 %v771_v18, %v767_v13  ;;  %v779_v24 = vadd.f32 %v778_v21, %v775_v20  ;;  %v788_v33 = vmul.f32 %v784_v39, %v784_v39 }
  0x8d   : > { %v789_v23 = vmul.f32 %v787_v49, %v787_v49  ;;  %vm1987_vm7 = vcmp.eq.f32.partialorder %v643_v25, 8.507059e+37  ;;  %v646_v38 = vor.u32 1.1754944e-38, %v645_v30  ;;  %v850_v61 = vmin.f32 %v1956_v51, %v1962_v54 }
  0x8e   : > { %v851_v62 = vmax.f32 %v1950_v41, %v1959_v52  ;;  %v563_v63 = vadd.f32 1.0, %v562_v42  ;;  %v642_v6 = vsel %vm1969_vm6, %v1838_v19, %v638_v45  ;;  %v738_v9 = vadd.s32 %v737_v58, %v1792_v31 }
  0x8f   : > { %v854_v32 = vmin.f32 %v1974_v59, %v1977_v56  ;;  %v2001_v14 = vpop.eup %1423  ;;  %vm569_vm8 = vcmp.lt.s32.totalorder %v1886_v53, 200  ;;  %v714_v2 = vadd.f32 %v713_v36, %v712_v11  ;;  %v855_v1 = vmax.f32 %v1982_v34, %v1985_v37 }
  0x90   : > { %v852_v4 = vsub.f32 %v850_v61, %v851_v62  ;;  %v632_v8 = vsub.f32 %v630_v55, %v631_v43  ;;  %v780_v16 = vsub.f32 %v779_v24, %v1979_v60  ;;  %v790_v17 = vadd.f32 %v789_v23, %v788_v33 }
  0x91   : > { %v647_v19 = vsel %vm1987_vm7, %v646_v38, %v642_v6  ;;  %v856_v12 = vsub.f32 %v854_v32, %v855_v1  ;;  %v859_v13 = vsub.f32 %v1956_v51, %v1950_v41  ;;  %v860_v5 = vsub.f32 %v1974_v59, %v1982_v34  ;;  %v2063_v38 = vld [vmem:[%s1674_s7 + $0xa8] sm:$0xff] }
  0x92   : > { %v2013_v53 = vsel %vm569_vm8, %v563_v63, 0.0  ;;  %vm655_vm9 = vcmp.lt.s32.totalorder %v1903_v27, 200  ;;  %v721_v7 = vmul.f32 %v2001_v14, %v1929_v15  ;;  %v739_v18 = vmul.u32 128, %v738_v9  ;;  %v2068_v6 = vld [vmem:[%s1662_s6 + $0x28] sm:$0xff] }
  0x93   : > { %v715_v20 = vmul.f32 0.25, %v714_v2  ;;  %v853_v21 = vmax.f32 %v852_v4, 0.0  ;;  %v857_v22 = vmax.f32 %v856_v12, 0.0  ;;  %v862_v25 = vsub.f32 %v1962_v54, %v1959_v52  ;;  %v2071_v9 = vld [vmem:[%s1674_s7 + $0x28] sm:$0xff] }
  0x94   : > { %v648_v30 = vmul.f32 %v647_v19, %v632_v8  ;;  %v2022_v39 = vmul.f32 %v1907_v29, %v1833_v10  ;;  %v2024_v42 = vadd.f32 1e-06, %v780_v16  ;;  %v2026_v43 = vadd.f32 1e-06, %v790_v17  ;;  %v2076_v4 = vld [vmem:[%s1662_s6 + $0xe8] sm:$0xff] }
  0x95   : > { %v792_v45 = vadd.f32 %v1857_v48, %v1845_v3  ;;  %v793_v49 = vadd.f32 %v1863_v40, %v1860_v35  ;;  %v861_v55 = vmul.f32 %v860_v5, %v859_v13  ;;  %v863_v57 = vsub.f32 %v1977_v56, %v1985_v37  ;;  %v2079_v1 = vld [vmem:[%s1674_s7 + $0xe8] sm:$0xff] }
  0x96   : > { %v722_v11 = vsub.f32 1.0, %v721_v7  ;;  %v795_v36 = vadd.f32 %v1868_v50, %v1848_v26  ;;  %v868_v10 = vmax.f32 %v1956_v51, %v1962_v54  ;;  %v869_v3 = vmin.f32 %v1950_v41, %v1959_v52  ;;  %v2084_v17 = vld [vmem:[%s1662_s6 + $0x68] sm:$0xff] }
  0x97   : > { %v796_v48 = vadd.f32 %v1874_v47, %v1871_v46  ;;  %v2043_v35 = vmul.f32 %v857_v22, %v853_v21  ;;  %v864_v40 = vmul.f32 %v863_v57, %v862_v25  ;;  %v871_v29 = vmax.f32 %v1974_v59, %v1977_v56  ;;  %v2087_v19 = vld [vmem:[%s1674_s7 + $0x68] sm:$0xff] }
  0x98   : > { %v2048_v26 = vadd.s32 %v739_v18, %v1835_v0  ;;  %v2052_v50 = vmul.f32 %v2026_v43, %v2024_v42  ;;  %v870_v58 = vsub.f32 %v868_v10, %v869_v3  ;;  %v872_v24 = vmin.f32 %v1982_v34, %v1985_v37  ;;  %v2201_v3 = vld [vmem:[%s1674_s7 + $0x70] sm:$0xff] }
  0x99   : > { %v649_v46 = vadd.f32 1.0, %v648_v30  ;;  %v2057_v47 = vmul.f32 %v715_v20, %v1905_v28  ;;  %v823_v33 = vstv %s822_s14  ;;  %v865_v23 = vadd.f32 %v864_v40, %v861_v55 }
  0x9a   : > { %v723_v61 = vmul.f32 %v2001_v14, %v722_v11  ;;  %vm725_vm10 = vweird.f32 %v1929_v15  ;;  %v873_v62 = vsub.f32 %v871_v29, %v872_v24  ;;  %v874_v63 = vmul.f32 %v870_v58, %v870_v58 }
  0x9b   : > { %vm726_vm11 = vweird.f32 %v2001_v14  ;;  %v794_v28 = vsub.f32 %v792_v45, %v793_v49  ;;  %v797_v32 = vsub.f32 %v795_v36, %v796_v48  ;;  %v866_v2 = vsub.f32 %v865_v23, %v2043_v35 }
  0x9c   : > { %1425 = vrcp.f32 %v2052_v50  ;;  %v824_v8 = vadd.s32 %v823_v33, %v1792_v31  ;;  %v875_v16 = vmul.f32 %v873_v62, %v873_v62  ;;  %v936_v12 = vmin.f32 %v2060_v44, %v2063_v38  ;;  %vm2106_vm12 = vmor %vm725_vm10, %vm726_vm11 }
  0x9d   : > { %v656_v13 = vsel %vm655_vm9, %v649_v46, 0.0  ;;  %v729_v5 = vand.u32 2147483647, %v1929_v15  ;;  %v731_v7 = vand.u32 2147483648, %v1929_v15  ;;  %v937_v18 = vmax.f32 %v2068_v6, %v2071_v9 }
  0x9e   : > { %v724_v20 = vadd.f32 %v2001_v14, %v723_v61  ;;  %v2098_v21 = vadd.f32 1e-06, %v866_v2  ;;  %v876_v22 = vadd.f32 %v875_v16, %v874_v63  ;;  %v940_v25 = vmin.f32 %v2076_v4, %v2079_v1 }
  0x9f   : > { %v798_v30 = vmul.f32 %v794_v28, %v794_v28  ;;  %v799_v45 = vmul.f32 %v797_v32, %v797_v32  ;;  %v938_v49 = vsub.f32 %v936_v12, %v937_v18  ;;  %v941_v55 = vmax.f32 %v2084_v17, %v2087_v19 }
  0xa0   : > { %v825_v57 = vmul.u32 128, %v824_v8  ;;  %v2112_v11 = vadd.f32 1e-06, %v876_v22  ;;  %v945_v36 = vsub.f32 %v2060_v44, %v2068_v6  ;;  %v946_v10 = vsub.f32 %v2076_v4, %v2084_v17 }
  0xa1   : > { %v718_v15 = vsub.f32 %v2057_v47, %v2022_v39  ;;  %vm2120_vm13 = vcmp.eq.f32.partialorder %v729_v5, 8.507059e+37  ;;  %v732_v48 = vor.u32 1.1754944e-38, %v731_v7  ;;  %v942_v40 = vsub.f32 %v940_v25, %v941_v55 }
  0xa2   : > { %v2124_v29 = vpop.eup %1425  ;;  %v728_v58 = vsel %vm2106_vm12, %v2001_v14, %v724_v20  ;;  %v2131_v24 = vmul.f32 %v2112_v11, %v2098_v21  ;;  %v939_v46 = vmax.f32 %v938_v49, 0.0  ;;  %v948_v39 = vsub.f32 %v2063_v38, %v2071_v9  ;;  %v2188_v49 = vld [vmem:[%s1662_s6 + $0xf0] sm:$0xff] }
  0xa3   : > { %v2136_v47 = vadd.f32 %v656_v13, %v2013_v53  ;;  %v800_v33 = vadd.f32 %v799_v45, %v798_v30  ;;  %v943_v23 = vmax.f32 %v942_v40, 0.0  ;;  %v949_v61 = vsub.f32 %v2079_v1, %v2087_v19  ;;  %v2182_v30 = vld [vmem:[%s1662_s6 + $0x30] sm:$0xff] }
  0xa4   : > { %v2141_v62 = vadd.s32 %v825_v57, %v1835_v0  ;;  %v878_v14 = vadd.f32 %v1956_v51, %v1950_v41  ;;  %v879_v63 = vadd.f32 %v1962_v54, %v1959_v52  ;;  %v947_v28 = vmul.f32 %v946_v10, %v945_v36  ;;  %v2185_v45 = vld [vmem:[%s1662_s6 + $0x70] sm:$0xff] }
  0xa5   : > { %v733_v32 = vsel %vm2120_vm13, %v732_v48, %v728_v58  ;;  %v2151_v53 = vmul.f32 %v2026_v43, %v1979_v60  ;;  %v807_v2 = vmul.f32 %v2124_v29, %v2052_v50  ;;  %1427 = vrcp.f32 %v2131_v24  ;;  %v2204_v48 = vld [vmem:[%s1674_s7 + $0xf0] sm:$0xff] }
  0xa6   : > { %v2157_v8 = vmul.f32 %v943_v23, %v939_v46  ;;  %v950_v41 = vmul.f32 %v949_v61, %v948_v39  ;;  %v954_v51 = vmax.f32 %v2060_v44, %v2063_v38  ;;  %v955_v52 = vmin.f32 %v2068_v6, %v2071_v9 }
  0xa7   : > { %v801_v54 = vmul.f32 0.25, %v800_v33  ;;  %v881_v60 = vadd.f32 %v1974_v59, %v1982_v34  ;;  %v882_v43 = vadd.f32 %v1977_v56, %v1985_v37  ;;  %v957_v16 = vmax.f32 %v2076_v4, %v2079_v1  ;;  %v2173_v34 = vld [vmem:[%s1662_s6 + $0xb0] sm:$0xff] }
  0xa8   : > { %v880_v12 = vsub.f32 %v878_v14, %v879_v63  ;;  %v951_v13 = vadd.f32 %v950_v41, %v947_v28  ;;  %v956_v5 = vsub.f32 %v954_v51, %v955_v52  ;;  %v958_v7 = vmin.f32 %v2084_v17, %v2087_v19  ;;  %v2176_v56 = vld [vmem:[%s1674_s7 + $0xb0] sm:$0xff] }
  0xa9   : > { %v734_v18 = vmul.f32 %v733_v32, %v718_v15  ;;  %v808_v20 = vsub.f32 1.0, %v807_v2  ;;  %vm811_vm14 = vweird.f32 %v2052_v50  ;;  %v909_v59 = vstv %s908_s15  ;;  %v2198_v15 = vld [vmem:[%s1674_s7 + $0x30] sm:$0xff] }
  0xaa   : > { %vm741_vm15 = vcmp.lt.s32.totalorder %v2048_v26, 200  ;;  %v815_v37 = vand.u32 2147483647, %v2052_v50  ;;  %v952_v22 = vsub.f32 %v951_v13, %v2157_v8  ;;  %v959_v25 = vsub.f32 %v957_v16, %v958_v7 }
  0xab   : > { %v960_v27 = vmul.f32 %v956_v5, %v956_v5  ;;  %v2190_v55 = vpop.eup %1427  ;;  %v2193_v57 = vmul.f32 %v801_v54, %v2024_v42  ;;  %vm812_vm0 = vweird.f32 %v2124_v29  ;;  %v817_v36 = vand.u32 2147483648, %v2052_v50 }
  0xac   : > { %v883_v10 = vsub.f32 %v881_v60, %v882_v43  ;;  %v884_v40 = vmul.f32 %v880_v12, %v880_v12  ;;  %v910_v58 = vadd.s32 %v909_v59, %v1792_v31  ;;  %v961_v46 = vmul.f32 %v959_v25, %v959_v25  ;;  %vm2241_vm2 = vmor %vm811_vm14, %vm812_vm0 }
  0xad   : > { %v1022_v39 = vmin.f32 %v2173_v34, %v2176_v56  ;;  %v809_v42 = vmul.f32 %v2124_v29, %v808_v20  ;;  %v2210_v33 = vadd.f32 1e-06, %v952_v22  ;;  %v964_v23 = vadd.f32 %v2060_v44, %v2068_v6 }
  0xae   : > { %v965_v61 = vadd.f32 %v2063_v38, %v2071_v9  ;;  %v962_v14 = vadd.f32 %v961_v46, %v960_v27  ;;  %v1023_v63 = vmax.f32 %v2182_v30, %v2198_v15  ;;  %v1026_v28 = vmin.f32 %v2188_v49, %v2204_v48 }
  0xaf   : > { %v1027_v32 = vmax.f32 %v2185_v45, %v2201_v3  ;;  %v885_v2 = vmul.f32 %v883_v10, %v883_v10  ;;  %v893_v41 = vmul.f32 %v2190_v55, %v2131_v24  ;;  %v967_v44 = vadd.f32 %v2076_v4, %v2084_v17  ;;  %v1387_v4 = vld [vmem:[%s1674_s7 + $0x38] sm:$0xff] }
  0xb0   : > { %v968_v38 = vadd.f32 %v2079_v1, %v2087_v19  ;;  %v735_v6 = vadd.f32 1.0, %v734_v18  ;;  %v2228_v9 = vadd.f32 1e-06, %v962_v14  ;;  %v1024_v51 = vsub.f32 %v1022_v39, %v1023_v63 }
  0xb1   : > { %v1028_v52 = vsub.f32 %v1026_v28, %v1027_v32  ;;  %v810_v54 = vadd.f32 %v2124_v29, %v809_v42  ;;  %vm2231_vm1 = vcmp.eq.f32.partialorder %v815_v37, 8.507059e+37  ;;  %v911_v43 = vmul.u32 128, %v910_v58 }
  0xb2   : > { %v966_v16 = vsub.f32 %v964_v23, %v965_v61  ;;  %v804_v12 = vsub.f32 %v2193_v57, %v2151_v53  ;;  %v2247_v1 = vmul.f32 %v2228_v9, %v2210_v33  ;;  %v1031_v17 = vsub.f32 %v2173_v34, %v2182_v30 }
  0xb3   : > { %v1032_v19 = vsub.f32 %v2188_v49, %v2185_v45  ;;  %v818_v13 = vor.u32 1.1754944e-38, %v817_v36  ;;  %v886_v5 = vadd.f32 %v885_v2, %v884_v40  ;;  %v894_v7 = vsub.f32 1.0, %v893_v41  ;;  %v2287_v2 = vld [vmem:[%s1662_s6 + $0xb8] sm:$0xff] }
  0xb4   : > { %v969_v18 = vsub.f32 %v967_v44, %v968_v38  ;;  %1429 = vrcp.f32 %v2247_v1  ;;  %v1025_v50 = vmax.f32 %v1024_v51, 0.0  ;;  %v1029_v20 = vmax.f32 %v1028_v52, 0.0  ;;  %v2290_v41 = vld [vmem:[%s1674_s7 + $0xb8] sm:$0xff] }
  0xb5   : > { %v1034_v59 = vsub.f32 %v2176_v56, %v2198_v15  ;;  %v2258_v37 = vsel %vm741_vm15, %v735_v6, 0.0  ;;  %v814_v22 = vsel %vm2241_vm2, %v2124_v29, %v810_v54  ;;  %v2264_v25 = vadd.s32 %v911_v43, %v1835_v0  ;;  %v2303_v54 = vld [vmem:[%s1662_s6 + $0xf8] sm:$0xff] }
  0xb6   : > { %v970_v27 = vmul.f32 %v966_v16, %v966_v16  ;;  %v1033_v36 = vmul.f32 %v1032_v19, %v1031_v17  ;;  %v1035_v10 = vsub.f32 %v2204_v48, %v2201_v3  ;;  %v1040_v40 = vmax.f32 %v2173_v34, %v2176_v56  ;;  %v1388_v17 = vld [vmem:[%s1674_s7 + $0x78] sm:$0xff] }
  0xb7   : > { %v1041_v26 = vmin.f32 %v2182_v30, %v2198_v15  ;;  %v895_v58 = vmul.f32 %v2190_v55, %v894_v7  ;;  %v971_v46 = vmul.f32 %v969_v18, %v969_v18  ;;  %v1043_v29 = vmax.f32 %v2188_v49, %v2204_v48  ;;  %v1390_v19 = vld [vmem:[%s1674_s7 + $0xf8] sm:$0xff] }
  0xb8   : > { %v1044_v39 = vmin.f32 %v2185_v45, %v2201_v3  ;;  %v887_v42 = vmul.f32 0.25, %v886_v5  ;;  %v2277_v23 = vmul.f32 %v1029_v20, %v1025_v50  ;;  %v1036_v61 = vmul.f32 %v1035_v10, %v1034_v59 }
  0xb9   : > { %v1042_v14 = vsub.f32 %v1040_v40, %v1041_v26  ;;  %v819_v63 = vsel %vm2231_vm1, %v818_v13, %v814_v22  ;;  %v2283_v28 = vmul.f32 %v2112_v11, %v2043_v35  ;;  %vm897_vm3 = vweird.f32 %v2131_v24  ;;  %v2297_v35 = vld [vmem:[%s1662_s6 + $0x38] sm:$0xff] }
  0xba   : > { %v1045_v32 = vsub.f32 %v1043_v29, %v1044_v39  ;;  %v2292_v44 = vpop.eup %1429  ;;  %v901_v38 = vand.u32 2147483647, %v2131_v24  ;;  %v903_v6 = vand.u32 2147483648, %v2131_v24  ;;  %v1037_v51 = vadd.f32 %v1036_v61, %v1033_v36  ;;  %v2300_v11 = vld [vmem:[%s1662_s6 + $0x78] sm:$0xff] }
  0xbb   : > { %v1046_v52 = vmul.f32 %v1042_v14, %v1042_v14  ;;  %v896_v60 = vadd.f32 %v2190_v55, %v895_v58  ;;  %vm898_vm4 = vweird.f32 %v2190_v55  ;;  %v972_v43 = vadd.f32 %v971_v46, %v970_v27 }
  0xbc   : > { %v1047_v16 = vmul.f32 %v1045_v32, %v1045_v32  ;;  %v1038_v13 = vsub.f32 %v1037_v51, %v2277_v23  ;;  %v1050_v5 = vadd.f32 %v2173_v34, %v2182_v30  ;;  %v1051_v7 = vadd.f32 %v2176_v56, %v2198_v15  ;;  %vm2328_vm5 = vmor %vm897_vm3, %vm898_vm4 }
  0xbd   : > { %v1108_v18 = vmin.f32 %v2287_v2, %v2290_v41  ;;  %v979_v50 = vmul.f32 %v2292_v44, %v2247_v1  ;;  %v1053_v59 = vadd.f32 %v2188_v49, %v2185_v45  ;;  %v1054_v22 = vadd.f32 %v2204_v48, %v2201_v3 }
  0xbe   : > { %v1048_v20 = vadd.f32 %v1047_v16, %v1046_v52  ;;  %v2332_v56 = vadd.f32 1e-06, %v1038_v13  ;;  %v1109_v30 = vmax.f32 %v2297_v35, %v1387_v4  ;;  %v1112_v15 = vmin.f32 %v2303_v54, %v1390_v19 }
  0xbf   : > { %v1113_v27 = vmax.f32 %v2300_v11, %v1388_v17  ;;  %v2338_v45 = vmul.f32 %v887_v42, %v2098_v21  ;;  %vm2340_vm6 = vcmp.eq.f32.partialorder %v901_v38, 8.507059e+37  ;;  %v904_v24 = vor.u32 1.1754944e-38, %v903_v6 }
  0xc0   : > { %v2344_v3 = vadd.f32 1e-06, %v1048_v20  ;;  %v973_v48 = vmul.f32 0.25, %v972_v43  ;;  %v995_v36 = vstv %s994_s17  ;;  %v1110_v10 = vsub.f32 %v1108_v18, %v1109_v30 }
  0xc1   : > { %v1114_v40 = vsub.f32 %v1112_v15, %v1113_v27  ;;  %v900_v26 = vsel %vm2328_vm5, %v2190_v55, %v896_v60  ;;  %v1052_v58 = vsub.f32 %v1050_v5, %v1051_v7  ;;  %v1055_v46 = vsub.f32 %v1053_v59, %v1054_v22 }
  0xc2   : > { %v2351_v21 = vmul.f32 %v2344_v3, %v2332_v56  ;;  %v2356_v29 = vmul.f32 %v819_v63, %v804_v12  ;;  %v980_v39 = vsub.f32 1.0, %v979_v50  ;;  %v1117_v42 = vsub.f32 %v2287_v2, %v2297_v35 }
  0xc3   : > { %v1118_v61 = vsub.f32 %v2303_v54, %v2300_v11  ;;  %v890_v55 = vsub.f32 %v2338_v45, %v2283_v28  ;;  %v1111_v14 = vmax.f32 %v1110_v10, 0.0  ;;  %v1115_v32 = vmax.f32 %v1114_v40, 0.0 }
  0xc4   : > { %1431 = vrcp.f32 %v2351_v21  ;;  %v905_v38 = vsel %vm2340_vm6, %v904_v24, %v900_v26  ;;  %v2368_v53 = vmul.f32 %v973_v48, %v2210_v33  ;;  %v2372_v57 = vmul.f32 %v2228_v9, %v2157_v8 }
  0xc5   : > { %v2375_v12 = vadd.s32 %v995_v36, %v1792_v31  ;;  %v989_v63 = vand.u32 2147483648, %v2247_v1  ;;  %v1056_v28 = vmul.f32 %v1052_v58, %v1052_v58  ;;  %v1057_v6 = vmul.f32 %v1055_v46, %v1055_v46 }
  0xc6   : > { %v1120_v51 = vsub.f32 %v2290_v41, %v1387_v4  ;;  %v981_v52 = vmul.f32 %v2292_v44, %v980_v39  ;;  %v1119_v60 = vmul.f32 %v1118_v61, %v1117_v42  ;;  %v1121_v43 = vsub.f32 %v1390_v19, %v1388_v17 }
  0xc7   : > { %v1126_v33 = vmax.f32 %v2287_v2, %v2290_v41  ;;  %v2382_v16 = vmul.f32 %v1115_v32, %v1111_v14  ;;  %v1127_v8 = vmin.f32 %v2297_v35, %v1387_v4  ;;  %v1129_v9 = vmax.f32 %v2303_v54, %v1390_v19 }
  0xc8   : > { %v1130_v13 = vmin.f32 %v2300_v11, %v1388_v17  ;;  %v1122_v5 = vmul.f32 %v1121_v43, %v1120_v51  ;;  %v1136_v7 = vadd.f32 %v2287_v2, %v2297_v35  ;;  %v1137_v18 = vadd.f32 %v2290_v41, %v1387_v4 }
  0xc9   : > { %v1139_v50 = vadd.f32 %v2303_v54, %v2300_v11  ;;  %v1058_v59 = vadd.f32 %v1057_v6, %v1056_v28  ;;  %v1128_v22 = vsub.f32 %v1126_v33, %v1127_v8  ;;  %v1140_v30 = vadd.f32 %v1390_v19, %v1388_v17 }
  0xca   : > { %v1432_v20 = vpop.eup %1431  ;;  %v1131_v34 = vsub.f32 %v1129_v9, %v1130_v13  ;;  %vm827_vm7 = vcmp.lt.s32.totalorder %v2141_v62, 200  ;;  %vm983_vm8 = vweird.f32 %v2247_v1  ;;  %vm984_vm9 = vweird.f32 %v2292_v44 }
  0xcb   : > { %v1065_v15 = vmul.f32 %v1432_v20, %v2351_v21  ;;  %v1123_v2 = vadd.f32 %v1122_v5, %v1119_v60  ;;  %v1132_v35 = vmul.f32 %v1128_v22, %v1128_v22  ;;  %v1138_v4 = vsub.f32 %v1136_v7, %v1137_v18  ;;  %vm2400_vm10 = vmor %vm983_vm8, %vm984_vm9 }
  0xcc   : > { %v1133_v41 = vmul.f32 %v1131_v34, %v1131_v34  ;;  %v1141_v27 = vsub.f32 %v1139_v50, %v1140_v30  ;;  %v982_v11 = vadd.f32 %v2292_v44, %v981_v52  ;;  %v987_v54 = vand.u32 2147483647, %v2247_v1 }
  0xcd   : > { %v1066_v45 = vsub.f32 1.0, %v1065_v15  ;;  %v1124_v17 = vsub.f32 %v1123_v2, %v2382_v16  ;;  %v990_v49 = vor.u32 1.1754944e-38, %v989_v63  ;;  %v1059_v24 = vmul.f32 0.25, %v1058_v59 }
  0xce   : > { %v1081_v48 = vstv %s1080_s18  ;;  %v1134_v36 = vadd.f32 %v1133_v41, %v1132_v35  ;;  %vm1069_vm11 = vweird.f32 %v2351_v21  ;;  %vm1070_vm12 = vweird.f32 %v1432_v20 }
  0xcf   : > { %v1067_v10 = vmul.f32 %v1432_v20, %v1066_v45  ;;  %v1125_v40 = vadd.f32 1e-06, %v1124_v17  ;;  %v1075_v26 = vand.u32 2147483648, %v2351_v21  ;;  %v1142_v1 = vmul.f32 %v1138_v4, %v1138_v4  ;;  %vm2412_vm14 = vmor %vm1069_vm11, %vm1070_vm12 }
  0xd0   : > { %v1135_v58 = vadd.f32 1e-06, %v1134_v36  ;;  %v1143_v46 = vmul.f32 %v1141_v27, %v1141_v27  ;;  %v986_v39 = vsel %vm2400_vm10, %v2292_v44, %v982_v11  ;;  %vm988_vm13 = vcmp.eq.f32.partialorder %v987_v54, 8.507059e+37 }
  0xd1   : > { %v1068_v42 = vadd.f32 %v1432_v20, %v1067_v10  ;;  %v1073_v61 = vand.u32 2147483647, %v2351_v21  ;;  %v821_v14 = vadd.f32 1.0, %v2356_v29  ;;  %v906_v32 = vmul.f32 %v905_v38, %v890_v55 }
  0xd2   : > { %v997_v63 = vmul.u32 128, %v2375_v12  ;;  %v1149_v6 = vmul.f32 %v1135_v58, %v1125_v40  ;;  %v976_v51 = vsub.f32 %v2368_v53, %v2372_v57  ;;  %v1060_v44 = vmul.f32 %v1059_v24, %v2332_v56 }
  0xd3   : > { %v1061_v52 = vmul.f32 %v2344_v3, %v2277_v23  ;;  %v1082_v21 = vadd.s32 %v1081_v48, %v1792_v31  ;;  %v991_v60 = vsel %vm988_vm13, %v990_v49, %v986_v39  ;;  %v1076_v29 = vor.u32 1.1754944e-38, %v1075_v26 }
  0xd4   : > { %v1144_v55 = vadd.f32 %v1143_v46, %v1142_v1  ;;  %1433 = vrcp.f32 %v1149_v6  ;;  %v1072_v38 = vsel %vm2412_vm14, %v1432_v20, %v1068_v42  ;;  %vm1074_vm15 = vcmp.eq.f32.partialorder %v1073_v61, 8.507059e+37 }
  0xd5   : > { %v743_v12 = vadd.f32 %v2258_v37, %v2136_v47  ;;  %v828_v56 = vsel %vm827_vm7, %v821_v14, 0.0  ;;  %v998_v53 = vadd.s32 %v997_v63, %v1835_v0  ;;  %v907_v23 = vadd.f32 1.0, %v906_v32 }
  0xd6   : > { %v992_v3 = vmul.f32 %v991_v60, %v976_v51  ;;  %v1062_v57 = vsub.f32 %v1060_v44, %v1061_v52  ;;  %v1167_v43 = vstv %s1166_s19  ;;  %vm913_vm0 = vcmp.lt.s32.totalorder %v2264_v25, 200 }
  0xd7   : > { %v1077_v33 = vsel %vm1074_vm15, %v1076_v29, %v1072_v38  ;;  %v1083_v8 = vmul.u32 128, %v1082_v21  ;;  %v1145_v9 = vmul.f32 0.25, %v1144_v55  ;;  %v829_v5 = vadd.f32 %v828_v56, %v743_v12 }
  0xd8   : > { %vm999_vm1 = vcmp.lt.s32.totalorder %v998_v53, 200  ;;  %v1168_v47 = vadd.s32 %v1167_v43, %v1792_v31  ;;  %v914_v37 = vsel %vm913_vm0, %v907_v23, 0.0  ;;  %v993_v62 = vadd.f32 1.0, %v992_v3 }
  0xd9   : > { %v1078_v7 = vmul.f32 %v1077_v33, %v1062_v57  ;;  %v1084_v50 = vadd.s32 %v1083_v8, %v1835_v0  ;;  %v1146_v20 = vmul.f32 %v1145_v9, %v1125_v40  ;;  %v1147_v59 = vmul.f32 %v1135_v58, %v2382_v16 }
  0xda   : > { %v1434_v13 = vpop.eup %1433  ;;  %v1161_v22 = vand.u32 2147483648, %v1149_v6  ;;  %vm1155_vm2 = vweird.f32 %v1149_v6  ;;  %v1159_v34 = vand.u32 2147483647, %v1149_v6  ;;  %v915_v30 = vadd.f32 %v914_v37, %v829_v5 }
  0xdb   : > { %v1151_v18 = vmul.f32 %v1434_v13, %v1149_v6  ;;  %vm1156_vm3 = vweird.f32 %v1434_v13  ;;  %v1169_v15 = vmul.u32 128, %v1168_v47  ;;  %v1000_v31 = vsel %vm999_vm1, %v993_v62, 0.0 }
  0xdc   : > { %v1079_v2 = vadd.f32 1.0, %v1078_v7  ;;  %vm1085_vm4 = vcmp.lt.s32.totalorder %v1084_v50, 200  ;;  %vm1157_vm5 = vmor %vm1155_vm2, %vm1156_vm3  ;;  %v1162_v41 = vor.u32 1.1754944e-38, %v1161_v22  ;;  %v1148_v4 = vsub.f32 %v1146_v20, %v1147_v59 }
  0xdd   : > { %v1152_v25 = vsub.f32 1.0, %v1151_v18  ;;  %vm1160_vm6 = vcmp.eq.f32.partialorder %v1159_v34, 8.507059e+37  ;;  %v1001_v16 = vadd.f32 %v1000_v31, %v915_v30  ;;  %v1170_v11 = vadd.s32 %v1169_v15, %v1835_v0 }
  0xde   : > { %v1086_v54 = vsel %vm1085_vm4, %v1079_v2, 0.0 }
  0xdf   : > { %v1153_v35 = vmul.f32 %v1434_v13, %v1152_v25  ;;  %v1087_v49 = vadd.f32 %v1086_v54, %v1001_v16  ;;  %vm1171_vm7 = vcmp.lt.s32.totalorder %v1170_v11, 200 }
  0xe1   : > { %v1154_v27 = vadd.f32 %v1434_v13, %v1153_v35 }
  0xe3   : > { %v1158_v45 = vsel %vm1157_vm5, %v1434_v13, %v1154_v27 }
  0xe4   : > { %v1163_v17 = vsel %vm1160_vm6, %v1162_v41, %v1158_v45 }
  0xe5   : > { %v1164_v19 = vmul.f32 %v1163_v17, %v1148_v4 }
  0xe7   : > { %v1165_v24 = vadd.f32 1.0, %v1164_v19 }
  0xe9   : > { %v1172_v48 = vsel %vm1171_vm7, %v1165_v24, 0.0 }
  0xea   : > { %v1173_v36 = vadd.f32 %v1172_v48, %v1087_v49 }
  0xec   : > { %1174 = vst [vmem:[%s483_s23] sm:$0xff] %v1173_v36 }
  0xed PF: > { %p9_p9 = scmp.ge.s32.totalorder %s1493_s13, 4   ;;  %s2479_s9 = smov %s1453_s10 }
  0xee   : > { %s2480_s10 = smov %s1502_s16  ;;  %s2481_s11 = smov %s1493_s13 }
  0xef   :  { %11 = sbr.rel (!%p9_p9) target bundleno = 2 (0x2), region = 209 }

</bundles_post_ra>
